<compile_context>
chip_gen: v7x
topology: tpu7x:2x2x1
jax: 0.10.0
libtpu: 0.0.40
codegen_flags: <defaults>
</compile_context>

<pallas_src>
import jax
import jax.numpy as jnp
from jax import lax
from jax.experimental import pallas as pl
from jax.experimental.pallas import tpu as pltpu

EPS = 1e-5


# --------------------------------------------------------------------------
# shared conv helper
# --------------------------------------------------------------------------
def _conv3x3_acc(pad_ref, w_ref):
    """3x3 conv over the padded bf16 tile.

    pad_ref: (Hb2+2, W2+1, C) bf16.  Rows 0 / Hb2+1 are the H halo; column W2
    is a zero column that serves as the right halo (kw=2) and, via one concat,
    the left halo (kw=0).  Returns the f32 accumulator (Hb2*W2, Cout).
    """
    Hp2, Wp, C = pad_ref.shape
    Hb2, W2 = Hp2 - 2, Wp - 1
    Cout = w_ref.shape[2]
    M = Hb2 * W2
    acc = jnp.zeros((M, Cout), jnp.float32)
    zcol = jnp.zeros((Hb2, 1, C), jnp.bfloat16)
    for kh in range(3):
        rows = pad_ref[kh:kh + Hb2, :, :]                          # (Hb2, W2+1, C)
        wins = (
            jnp.concatenate([zcol, rows[:, 0:W2 - 1, :]], axis=1),  # kw=0 (col wo-1)
            rows[:, 0:W2, :],                                        # kw=1 (col wo)
            rows[:, 1:W2 + 1, :],                                    # kw=2 (col wo+1)
        )
        for kw in range(3):
            acc = acc + jnp.dot(wins[kw].reshape(M, C), w_ref[kh * 3 + kw],
                                preferred_element_type=jnp.float32)
    return acc


# --------------------------------------------------------------------------
# kernel 1: max_unpool2d + conv1 + partial BN1 stats
# --------------------------------------------------------------------------
def _unpool_conv1_kernel(x_ref, x_top_ref, x_bot_ref,
                         ix_ref, ix_top_ref, ix_bot_ref,
                         w_ref, a1_ref, st_ref, pad_ref):
    i = pl.program_id(1)
    n_rb = pl.num_programs(1)
    Hp, W2, C = x_ref.shape[1], x_ref.shape[2], x_ref.shape[3]
    Hb2 = 2 * Hp
    row0 = i * Hb2                      # absolute full-res row of this tile

    # Zero the padded scratch: halo rows / trailing column supply the conv's
    # zero padding; the interior is fully overwritten below.
    pad_ref[...] = jnp.zeros_like(pad_ref)

    # ---- max_unpool2d (k=2, s=2): one select + one aligned interior store --
    xv = x_ref[0]                        # (Hp, W2, C) bf16
    iv = ix_ref[0]                       # (Hp, W2, C) int32
    shp = (Hp, 2, W2, C)
    hp = lax.broadcasted_iota(jnp.int32, shp, 0)
    sub = lax.broadcasted_iota(jnp.int32, shp, 1)
    wo = lax.broadcasted_iota(jnp.int32, shp, 2)
    targ = (row0 + 2 * hp + sub) * W2 + wo
    up = jnp.where(iv[:, None, :, :] == targ, xv[:, None, :, :],
                   jnp.zeros((), jnp.bfloat16))
    pad_ref[1:Hb2 + 1, 0:W2, :] = up.reshape(Hb2, W2, C)

    # ---- unpooled halo rows (full-res rows row0-1 / row0+Hb2) --------------
    wo1 = lax.broadcasted_iota(jnp.int32, (1, W2, C), 1)

    @pl.when(i > 0)
    def _():
        xt = x_top_ref[...].reshape(1, W2, C)
        it = ix_top_ref[...].reshape(1, W2, C)
        v = jnp.where(it == (row0 - 1) * W2 + wo1, xt,
                      jnp.zeros((), jnp.bfloat16))
        pad_ref[0:1, 0:W2, :] = v

    @pl.when(i < n_rb - 1)
    def _():
        xb = x_bot_ref[...].reshape(1, W2, C)
        ib = ix_bot_ref[...].reshape(1, W2, C)
        v = jnp.where(ib == (row0 + Hb2) * W2 + wo1, xb,
                      jnp.zeros((), jnp.bfloat16))
        pad_ref[Hb2 + 1:Hb2 + 2, 0:W2, :] = v

    # ---- conv1 (bias dropped: exactly absorbed by training-mode BN) --------
    acc = _conv3x3_acc(pad_ref, w_ref)                 # (Hb2*W2, C1) f32
    a1_ref[...] = acc.reshape(1, Hb2, W2, acc.shape[-1])

    # ---- per-block partial BN1 statistics (reduced in the wrapper) ---------
    s1 = jnp.sum(acc, axis=0, keepdims=True)
    s2 = jnp.sum(acc * acc, axis=0, keepdims=True)
    st_ref[...] = jnp.concatenate([s1, s2], axis=0).reshape(1, 1, 2, -1)


# --------------------------------------------------------------------------
# kernel 2: BN1 normalize + ReLU + conv2 + partial BN2 stats
# --------------------------------------------------------------------------
def _bn_conv2_kernel(a_ref, a_top_ref, a_bot_ref, sc_ref, sh_ref,
                     w_ref, a2_ref, st_ref, pad_ref):
    i = pl.program_id(1)
    n_rb = pl.num_programs(1)
    Hb2, W2, C = a_ref.shape[1], a_ref.shape[2], a_ref.shape[3]
    sc = sc_ref[...]                    # (1, C) f32
    sh = sh_ref[...]

    pad_ref[...] = jnp.zeros_like(pad_ref)

    # BN1 scale/shift + ReLU fused into the bf16 pad writeback (aligned).
    interior = jnp.maximum(a_ref[0] * sc + sh, 0.0)
    pad_ref[1:Hb2 + 1, 0:W2, :] = interior.astype(jnp.bfloat16)

    @pl.when(i > 0)
    def _():
        v = jnp.maximum(a_top_ref[...].reshape(1, W2, C) * sc + sh, 0.0)
        pad_ref[0:1, 0:W2, :] = v.astype(jnp.bfloat16)

    @pl.when(i < n_rb - 1)
    def _():
        v = jnp.maximum(a_bot_ref[...].reshape(1, W2, C) * sc + sh, 0.0)
        pad_ref[Hb2 + 1:Hb2 + 2, 0:W2, :] = v.astype(jnp.bfloat16)

    acc = _conv3x3_acc(pad_ref, w_ref)                 # (Hb2*W2, C2) f32
    a2_ref[...] = acc.reshape(1, Hb2, W2, acc.shape[-1])

    s1 = jnp.sum(acc, axis=0, keepdims=True)
    s2 = jnp.sum(acc * acc, axis=0, keepdims=True)
    st_ref[...] = jnp.concatenate([s1, s2], axis=0).reshape(1, 1, 2, -1)


# --------------------------------------------------------------------------
# kernel 3: BN2 normalize + ReLU (final output pass)
# --------------------------------------------------------------------------
def _bn_relu_kernel(a_ref, sc_ref, sh_ref, o_ref):
    o_ref[...] = jnp.maximum(a_ref[...] * sc_ref[...] + sh_ref[...], 0.0)


# --------------------------------------------------------------------------
# wrapper
# --------------------------------------------------------------------------
def _pick_pooled_row_block(h, max_rows=16):
    # Largest divisor of h that is <= max_rows, preferring >= 2 row blocks so
    # the grid actually pipelines / can be megacore-sharded.
    cap = min(h, max_rows)
    if h > 1:
        cap = min(cap, max(1, h // 2))
    best = 1
    for d in range(1, cap + 1):
        if h % d == 0:
            best = d
    return best


def _compiler_params():
    # Per-generation VMEM budget: ~75% of physical, capped at 100 MiB on the
    # 128-MiB parts (v5e/v6e); on v7x (64 MiB) this leaves headroom for the
    # pipeline's double buffers.
    try:
        cap = int(pltpu.get_tpu_info().vmem_capacity_bytes)
    except Exception:
        cap = 64 * 1024 * 1024
    limit = min(cap * 3 // 4, 100 * 1024 * 1024)
    return pltpu.CompilerParams(
        dimension_semantics=("parallel", "parallel"),
        vmem_limit_bytes=int(limit))


def _bn_scale_shift(partial_stats, gamma, beta, m_total):
    # partial_stats: (N, n_row_blocks, 2, C); reduce to global mean / var and
    # fold gamma/beta into a per-channel scale + shift.
    s = jnp.sum(partial_stats, axis=(0, 1))            # (2, C)
    mean = s[0] / m_total
    var = jnp.maximum(s[1] / m_total - mean * mean, 0.0)
    scale = gamma * lax.rsqrt(var + EPS)               # (1, C)
    shift = beta - mean * scale                        # (1, C)
    return scale.astype(jnp.float32), shift.astype(jnp.float32)


def decoder_forward(x, indices, size, params):
    """x, indices: (N, C_in, H, W) NCHW; size = (N, C_in, 2H, 2W). Returns NCHW."""
    N, Cin, H, W = x.shape
    H2, W2 = int(size[-2]), int(size[-1])
    assert H2 == 2 * H and W2 == 2 * W
    Cout = params["w2"].shape[-1]

    hb_p = _pick_pooled_row_block(H)        # pooled rows per grid step
    hb2 = 2 * hb_p                          # full-res rows per grid step
    n_rb = H // hb_p
    m_total = float(N * H2 * W2)

    # NCHW -> NHWC glue; conv operands are bf16 anyway so ship x as bf16.
    x_nhwc = jnp.transpose(x, (0, 2, 3, 1)).astype(jnp.bfloat16)
    idx_nhwc = jnp.transpose(indices, (0, 2, 3, 1)).astype(jnp.int32)
    x_w = jnp.repeat(x_nhwc, 2, axis=2)     # (N, H, W2, Cin) bf16
    idx_w = jnp.repeat(idx_nhwc, 2, axis=2)  # (N, H, W2, Cin) int32

    # Weights as (9, Cin, Cout_i) bf16; conv biases b1/b2 are intentionally
    # unused: bias followed by training-mode BatchNorm cancels exactly.
    w1 = params["w1"].astype(jnp.bfloat16)
    w2 = params["w2"].astype(jnp.bfloat16)

    cparams = _compiler_params()
    grid = (N, n_rb)

    def row_spec(c, blk_rows):
        return pl.BlockSpec((1, blk_rows, W2, c), lambda n, i: (n, i, 0, 0))

    def halo_specs(c, h_total, rows_per_block):
        top = pl.BlockSpec(
            (1, 1, W2, c),
            lambda n, i: (n, jnp.maximum(i * rows_per_block - 1, 0), 0, 0))
        bot = pl.BlockSpec(
            (1, 1, W2, c),
            lambda n, i: (n, jnp.minimum((i + 1) * rows_per_block, h_total - 1), 0, 0))
        return top, bot

    def const_spec(shape):
        nd = len(shape)
        return pl.BlockSpec(shape, lambda n, i: (0,) * nd)

    # ---------------- pass 1: unpool + conv1 + partial BN1 stats ------------
    x_top_spec, x_bot_spec = halo_specs(Cin, H, hb_p)
    a1, st1 = pl.pallas_call(
        _unpool_conv1_kernel,
        grid=grid,
        in_specs=[
            row_spec(Cin, hb_p), x_top_spec, x_bot_spec,     # x rows + halos
            row_spec(Cin, hb_p), x_top_spec, x_bot_spec,     # idx rows + halos
            const_spec((9, Cin, Cin)),                       # w1
        ],
        out_specs=(
            pl.BlockSpec((1, hb2, W2, Cin), lambda n, i: (n, i, 0, 0)),
            pl.BlockSpec((1, 1, 2, Cin), lambda n, i: (n, i, 0, 0)),
        ),
        out_shape=(
            jax.ShapeDtypeStruct((N, H2, W2, Cin), jnp.float32),
            jax.ShapeDtypeStruct((N, n_rb, 2, Cin), jnp.float32),
        ),
        scratch_shapes=[pltpu.VMEM((hb2 + 2, W2 + 1, Cin), jnp.bfloat16)],
        compiler_params=cparams,
    )(x_w, x_w, x_w, idx_w, idx_w, idx_w, w1)

    scale1, shift1 = _bn_scale_shift(st1, params["g1"], params["be1"], m_total)

    # ---------------- pass 2: BN1+ReLU + conv2 + partial BN2 stats ----------
    a_top_spec, a_bot_spec = halo_specs(Cin, H2, hb2)
    a2, st2 = pl.pallas_call(
        _bn_conv2_kernel,
        grid=grid,
        in_specs=[
            row_spec(Cin, hb2), a_top_spec, a_bot_spec,      # a1 rows + halos
            const_spec((1, Cin)), const_spec((1, Cin)),      # scale1, shift1
            const_spec((9, Cin, Cout)),                      # w2
        ],
        out_specs=(
            pl.BlockSpec((1, hb2, W2, Cout), lambda n, i: (n, i, 0, 0)),
            pl.BlockSpec((1, 1, 2, Cout), lambda n, i: (n, i, 0, 0)),
        ),
        out_shape=(
            jax.ShapeDtypeStruct((N, H2, W2, Cout), jnp.float32),
            jax.ShapeDtypeStruct((N, n_rb, 2, Cout), jnp.float32),
        ),
        scratch_shapes=[pltpu.VMEM((hb2 + 2, W2 + 1, Cin), jnp.bfloat16)],
        compiler_params=cparams,
    )(a1, a1, a1, scale1, shift1, w2)

    scale2, shift2 = _bn_scale_shift(st2, params["g2"], params["be2"], m_total)

    # ---------------- pass 3: BN2 normalize + ReLU --------------------------
    out_nhwc = pl.pallas_call(
        _bn_relu_kernel,
        grid=grid,
        in_specs=[
            row_spec(Cout, hb2),
            const_spec((1, Cout)), const_spec((1, Cout)),
        ],
        out_specs=pl.BlockSpec((1, hb2, W2, Cout), lambda n, i: (n, i, 0, 0)),
        out_shape=jax.ShapeDtypeStruct((N, H2, W2, Cout), jnp.float32),
        compiler_params=cparams,
    )(a2, scale2, shift2)

    return jnp.transpose(out_nhwc, (0, 3, 1, 2))   # back to NCHW


# --------------------------------------------------------------------------
# parameters + pure-JAX reference
# --------------------------------------------------------------------------
def init_params(key, c_in, c_out):
    ks = jax.random.split(key, 8)
    return {
        "w1": 0.1 * jax.random.normal(ks[0], (9, c_in, c_in), jnp.float32),
        "b1": 0.1 * jax.random.normal(ks[1], (1, c_in), jnp.float32),
        "g1": 1.0 + 0.1 * jax.random.normal(ks[2], (1, c_in), jnp.float32),
        "be1": 0.1 * jax.random.normal(ks[3], (1, c_in), jnp.float32),
        "w2": 0.1 * jax.random.normal(ks[4], (9, c_in, c_out), jnp.float32),
        "b2": 0.1 * jax.random.normal(ks[5], (1, c_out), jnp.float32),
        "g2": 1.0 + 0.1 * jax.random.normal(ks[6], (1, c_out), jnp.float32),
        "be2": 0.1 * jax.random.normal(ks[7], (1, c_out), jnp.float32),
    }


def reference_forward(x, indices, size, params):
    """Pure-JAX reference matching PyTorch semantics (NCHW, f32 precision)."""
    N, Cin, H, W = x.shape
    H2, W2 = int(size[-2]), int(size[-1])
    up = jnp.zeros((N, Cin, H2 * W2), jnp.float32)
    scat = jax.vmap(jax.vmap(lambda u, i, v: u.at[i].set(v)))
    up = scat(up, indices.reshape(N, Cin, H * W), x.reshape(N, Cin, H * W))
    up = up.reshape(N, Cin, H2, W2)

    def block(inp, w, b, g, be):
        c_in, c_out = w.shape[1], w.shape[2]
        w4 = w.reshape(3, 3, c_in, c_out)                     # HWIO
        y = lax.conv_general_dilated(
            inp, w4, window_strides=(1, 1), padding=((1, 1), (1, 1)),
            dimension_numbers=("NCHW", "HWIO", "NCHW"),
            precision=lax.Precision.HIGHEST)
        y = y + b.reshape(1, -1, 1, 1)
        mean = jnp.mean(y, axis=(0, 2, 3), keepdims=True)
        var = jnp.mean((y - mean) ** 2, axis=(0, 2, 3), keepdims=True)
        y = (y - mean) * lax.rsqrt(var + EPS) * g.reshape(1, -1, 1, 1) \
            + be.reshape(1, -1, 1, 1)
        return jnp.maximum(y, 0.0)

    y = block(up, params["w1"], params["b1"], params["g1"], params["be1"])
    y = block(y, params["w2"], params["b2"], params["g2"], params["be2"])
    return y


if __name__ == "__main__":
    key = jax.random.PRNGKey(0)
    N, Cin, Cout, H, W = 2, 4, 8, 8, 8
    H2, W2 = 2 * H, 2 * W
    k1, k2, k3, kp = jax.random.split(key, 4)

    x = jax.random.normal(k1, (N, Cin, H, W), jnp.float32)
    # Indices as produced by max_pool2d(kernel=2, stride=2): each pooled pixel
    # points at one of the 4 positions of its own 2x2 window (flat over H2*W2).
    rh = jax.random.randint(k2, (N, Cin, H, W), 0, 2)
    rw = jax.random.randint(k3, (N, Cin, H, W), 0, 2)
    hgrid = jnp.arange(H).reshape(1, 1, H, 1)
    wgrid = jnp.arange(W).reshape(1, 1, 1, W)
    indices = ((2 * hgrid + rh) * W2 + (2 * wgrid + rw)).astype(jnp.int32)

    size = (N, Cin, H2, W2)
    params = init_params(kp, Cin, Cout)

    out = jax.block_until_ready(decoder_forward(x, indices, size, params))
    ref = jax.block_until_ready(reference_forward(x, indices, size, params))

    assert out.shape == (N, Cout, H2, W2), out.shape
    max_err = float(jnp.max(jnp.abs(out - ref)))
    # bf16 MXU matmuls (f32 accumulation) vs the f32 reference.
    assert max_err < 5e-2, f"mismatch vs reference: {max_err}"

    print("KERNEL_OK")
</pallas_src>

<mosaic_0001>
module attributes {stable_mosaic.version = 11 : i64} {
  func.func @_unpool_conv1_kernel(%arg0: i32, %arg1: i32, %arg2: memref<1x4x16x4xbf16, #tpu.memory_space<vmem>>, %arg3: memref<1x1x16x4xbf16, #tpu.memory_space<vmem>>, %arg4: memref<1x1x16x4xbf16, #tpu.memory_space<vmem>>, %arg5: memref<1x4x16x4xi32, #tpu.memory_space<vmem>>, %arg6: memref<1x1x16x4xi32, #tpu.memory_space<vmem>>, %arg7: memref<1x1x16x4xi32, #tpu.memory_space<vmem>>, %arg8: memref<9x4x4xbf16, #tpu.memory_space<vmem>>, %arg9: memref<1x8x16x4xf32, #tpu.memory_space<vmem>>, %arg10: memref<1x1x2x4xf32, #tpu.memory_space<vmem>>, %arg11: memref<10x17x4xbf16, #tpu.memory_space<vmem>>) attributes {dimension_semantics = [#tpu.dimension_semantics<parallel>, #tpu.dimension_semantics<parallel>], iteration_bounds = array<i64: 2, 2>, scalar_prefetch = 0 : i64, scratch_operands = 1 : i64, tpu.core_type = #tpu.core_type<tc>, window_params = [{transform_indices = @transform_0, window_bounds = array<i64: 1, 4, 16, 4>}, {transform_indices = @transform_1, window_bounds = array<i64: 1, 1, 16, 4>}, {transform_indices = @transform_2, window_bounds = array<i64: 1, 1, 16, 4>}, {transform_indices = @transform_3, window_bounds = array<i64: 1, 4, 16, 4>}, {transform_indices = @transform_4, window_bounds = array<i64: 1, 1, 16, 4>}, {transform_indices = @transform_5, window_bounds = array<i64: 1, 1, 16, 4>}, {pipeline_mode = #tpu.pipeline_mode<synchronous>, transform_indices = @transform_6, window_bounds = array<i64: 9, 4, 4>}, {transform_indices = @transform_7, window_bounds = array<i64: 1, 8, 16, 4>}, {transform_indices = @transform_8, window_bounds = array<i64: 1, 1, 2, 4>}]} {
    %c8_i32 = arith.constant 8 : i32
    %0 = arith.muli %arg1, %c8_i32 : i32
    %cst = arith.constant 0.000000e+00 : bf16
    %1 = vector.broadcast %cst : bf16 to vector<10x17x4xbf16>
    %c0 = arith.constant 0 : index
    %c0_0 = arith.constant 0 : index
    %c0_1 = arith.constant 0 : index
    %2 = vector.load %arg11[%c0, %c0_0, %c0_1] : memref<10x17x4xbf16, #tpu.memory_space<vmem>>, vector<10x17x4xbf16>
    tpu.vector_store %arg11[%c0, %c0_0, %c0_1], %1 {strides = array<i32>} : memref<10x17x4xbf16, #tpu.memory_space<vmem>>, vector<10x17x4xbf16>,
    %c0_2 = arith.constant 0 : index
    %c0_3 = arith.constant 0 : index
    %c0_4 = arith.constant 0 : index
    %c0_5 = arith.constant 0 : index
    %3 = vector.load %arg2[%c0_2, %c0_3, %c0_4, %c0_5] : memref<1x4x16x4xbf16, #tpu.memory_space<vmem>>, vector<1x4x16x4xbf16>
    %4 = vector.shape_cast %3 : vector<1x4x16x4xbf16> to vector<4x16x4xbf16>
    %c0_6 = arith.constant 0 : index
    %c0_7 = arith.constant 0 : index
    %c0_8 = arith.constant 0 : index
    %c0_9 = arith.constant 0 : index
    %5 = vector.load %arg5[%c0_6, %c0_7, %c0_8, %c0_9] : memref<1x4x16x4xi32, #tpu.memory_space<vmem>>, vector<1x4x16x4xi32>
    %6 = vector.shape_cast %5 : vector<1x4x16x4xi32> to vector<4x16x4xi32>
    %7 = tpu.iota {dimensions = array<i32: 0>} : vector<4x2x16x4xi32>
    %8 = tpu.iota {dimensions = array<i32: 1>} : vector<4x2x16x4xi32>
    %9 = tpu.iota {dimensions = array<i32: 2>} : vector<4x2x16x4xi32>
    %c2_i32 = arith.constant 2 : i32
    %10 = vector.broadcast %c2_i32 : i32 to vector<4x2x16x4xi32>
    %11 = arith.muli %10, %7 : vector<4x2x16x4xi32>
    %12 = vector.broadcast %0 : i32 to vector<4x2x16x4xi32>
    %13 = arith.addi %12, %11 : vector<4x2x16x4xi32>
    %14 = arith.addi %13, %8 : vector<4x2x16x4xi32>
    %c16_i32 = arith.constant 16 : i32
    %15 = vector.broadcast %c16_i32 : i32 to vector<4x2x16x4xi32>
    %16 = arith.muli %14, %15 : vector<4x2x16x4xi32>
    %17 = arith.addi %16, %9 : vector<4x2x16x4xi32>
    %18 = vector.shape_cast %6 : vector<4x16x4xi32> to vector<4x1x16x4xi32>
    %19 = vector.broadcast %18 : vector<4x1x16x4xi32> to vector<4x2x16x4xi32>
    %20 = arith.cmpi eq, %19, %17 : vector<4x2x16x4xi32>
    %21 = vector.shape_cast %4 : vector<4x16x4xbf16> to vector<4x1x16x4xbf16>
    %cst_10 = arith.constant 0.000000e+00 : bf16
    %22 = vector.shape_cast %21 : vector<4x1x16x4xbf16> to vector<4x1x16x4xbf16>
    %23 = vector.broadcast %22 : vector<4x1x16x4xbf16> to vector<4x2x16x4xbf16>
    %24 = vector.broadcast %cst_10 : bf16 to vector<4x2x16x4xbf16>
    %25 = arith.select %20, %23, %24 : vector<4x2x16x4xi1>, vector<4x2x16x4xbf16>
    %26 = vector.shape_cast %25 : vector<4x2x16x4xbf16> to vector<8x16x4xbf16>
    %c1 = arith.constant 1 : index
    %c0_11 = arith.constant 0 : index
    %c0_12 = arith.constant 0 : index
    %27 = vector.load %arg11[%c1, %c0_11, %c0_12] : memref<10x17x4xbf16, #tpu.memory_space<vmem>>, vector<8x16x4xbf16>
    tpu.vector_store %arg11[%c1, %c0_11, %c0_12], %26 {strides = array<i32>} : memref<10x17x4xbf16, #tpu.memory_space<vmem>>, vector<8x16x4xbf16>,
    %28 = tpu.iota {dimensions = array<i32: 1>} : vector<1x16x4xi32>
    %c0_i32 = arith.constant 0 : i32
    %29 = arith.cmpi sgt, %arg1, %c0_i32 : i32
    %30 = arith.extui %29 : i1 to i32
    %c0_i32_13 = arith.constant 0 : i32
    %31 = arith.cmpi ne, %30, %c0_i32_13 : i32
    scf.if %31 {
      %c0_65 = arith.constant 0 : index
      %c0_66 = arith.constant 0 : index
      %c0_67 = arith.constant 0 : index
      %c0_68 = arith.constant 0 : index
      %107 = vector.load %arg3[%c0_65, %c0_66, %c0_67, %c0_68] : memref<1x1x16x4xbf16, #tpu.memory_space<vmem>>, vector<1x1x16x4xbf16>
      %108 = vector.shape_cast %107 : vector<1x1x16x4xbf16> to vector<1x16x4xbf16>
      %c0_69 = arith.constant 0 : index
      %c0_70 = arith.constant 0 : index
      %c0_71 = arith.constant 0 : index
      %c0_72 = arith.constant 0 : index
      %109 = vector.load %arg6[%c0_69, %c0_70, %c0_71, %c0_72] : memref<1x1x16x4xi32, #tpu.memory_space<vmem>>, vector<1x1x16x4xi32>
      %110 = vector.shape_cast %109 : vector<1x1x16x4xi32> to vector<1x16x4xi32>
      %c1_i32_73 = arith.constant 1 : i32
      %111 = arith.subi %0, %c1_i32_73 : i32
      %c16_i32_74 = arith.constant 16 : i32
      %112 = arith.muli %111, %c16_i32_74 : i32
      %113 = vector.broadcast %112 : i32 to vector<1x16x4xi32>
      %114 = arith.addi %113, %28 : vector<1x16x4xi32>
      %115 = arith.cmpi eq, %110, %114 : vector<1x16x4xi32>
      %cst_75 = arith.constant 0.000000e+00 : bf16
      %116 = vector.broadcast %cst_75 : bf16 to vector<1x16x4xbf16>
      %117 = arith.select %115, %108, %116 : vector<1x16x4xi1>, vector<1x16x4xbf16>
      %c0_76 = arith.constant 0 : index
      %c0_77 = arith.constant 0 : index
      %c0_78 = arith.constant 0 : index
      %118 = vector.load %arg11[%c0_76, %c0_77, %c0_78] : memref<10x17x4xbf16, #tpu.memory_space<vmem>>, vector<1x16x4xbf16>
      tpu.vector_store %arg11[%c0_76, %c0_77, %c0_78], %117 {strides = array<i32>} : memref<10x17x4xbf16, #tpu.memory_space<vmem>>, vector<1x16x4xbf16>,
    } else {
    }
    %c1_i32 = arith.constant 1 : i32
    %32 = arith.cmpi slt, %arg1, %c1_i32 : i32
    %33 = arith.extui %32 : i1 to i32
    %c0_i32_14 = arith.constant 0 : i32
    %34 = arith.cmpi ne, %33, %c0_i32_14 : i32
    scf.if %34 {
      %c0_65 = arith.constant 0 : index
      %c0_66 = arith.constant 0 : index
      %c0_67 = arith.constant 0 : index
      %c0_68 = arith.constant 0 : index
      %107 = vector.load %arg4[%c0_65, %c0_66, %c0_67, %c0_68] : memref<1x1x16x4xbf16, #tpu.memory_space<vmem>>, vector<1x1x16x4xbf16>
      %108 = vector.shape_cast %107 : vector<1x1x16x4xbf16> to vector<1x16x4xbf16>
      %c0_69 = arith.constant 0 : index
      %c0_70 = arith.constant 0 : index
      %c0_71 = arith.constant 0 : index
      %c0_72 = arith.constant 0 : index
      %109 = vector.load %arg7[%c0_69, %c0_70, %c0_71, %c0_72] : memref<1x1x16x4xi32, #tpu.memory_space<vmem>>, vector<1x1x16x4xi32>
      %110 = vector.shape_cast %109 : vector<1x1x16x4xi32> to vector<1x16x4xi32>
      %c8_i32_73 = arith.constant 8 : i32
      %111 = arith.addi %0, %c8_i32_73 : i32
      %c16_i32_74 = arith.constant 16 : i32
      %112 = arith.muli %111, %c16_i32_74 : i32
      %113 = vector.broadcast %112 : i32 to vector<1x16x4xi32>
      %114 = arith.addi %113, %28 : vector<1x16x4xi32>
      %115 = arith.cmpi eq, %110, %114 : vector<1x16x4xi32>
      %cst_75 = arith.constant 0.000000e+00 : bf16
      %116 = vector.broadcast %cst_75 : bf16 to vector<1x16x4xbf16>
      %117 = arith.select %115, %108, %116 : vector<1x16x4xi1>, vector<1x16x4xbf16>
      %c9 = arith.constant 9 : index
      %c0_76 = arith.constant 0 : index
      %c0_77 = arith.constant 0 : index
      %118 = vector.load %arg11[%c9, %c0_76, %c0_77] : memref<10x17x4xbf16, #tpu.memory_space<vmem>>, vector<1x16x4xbf16>
      tpu.vector_store %arg11[%c9, %c0_76, %c0_77], %117 {strides = array<i32>} : memref<10x17x4xbf16, #tpu.memory_space<vmem>>, vector<1x16x4xbf16>,
    } else {
    }
    %cst_15 = arith.constant 0.000000e+00 : f32
    %35 = vector.broadcast %cst_15 : f32 to vector<128x4xf32>
    %cst_16 = arith.constant 0.000000e+00 : bf16
    %36 = vector.broadcast %cst_16 : bf16 to vector<8x1x4xbf16>
    %c0_17 = arith.constant 0 : index
    %c0_18 = arith.constant 0 : index
    %c0_19 = arith.constant 0 : index
    %37 = vector.load %arg11[%c0_17, %c0_18, %c0_19] : memref<10x17x4xbf16, #tpu.memory_space<vmem>>, vector<8x17x4xbf16>
    %38 = vector.extract_strided_slice %37 {offsets = [0, 0, 0], sizes = [8, 15, 4], strides = [1, 1, 1]} : vector<8x17x4xbf16> to vector<8x15x4xbf16>
    %39 = tpu.concatenate %36, %38 in 1 : vector<8x1x4xbf16>, vector<8x15x4xbf16> -> vector<8x16x4xbf16>
    %40 = vector.extract_strided_slice %37 {offsets = [0, 0, 0], sizes = [8, 16, 4], strides = [1, 1, 1]} : vector<8x17x4xbf16> to vector<8x16x4xbf16>
    %41 = vector.extract_strided_slice %37 {offsets = [0, 1, 0], sizes = [8, 16, 4], strides = [1, 1, 1]} : vector<8x17x4xbf16> to vector<8x16x4xbf16>
    %42 = vector.shape_cast %39 : vector<8x16x4xbf16> to vector<128x4xbf16>
    %c0_20 = arith.constant 0 : index
    %c0_21 = arith.constant 0 : index
    %c0_22 = arith.constant 0 : index
    %43 = vector.load %arg8[%c0_20, %c0_21, %c0_22] : memref<9x4x4xbf16, #tpu.memory_space<vmem>>, vector<1x4x4xbf16>
    %44 = vector.shape_cast %43 : vector<1x4x4xbf16> to vector<4x4xbf16>
    %cst_23 = arith.constant dense<0.000000e+00> : vector<128x4xf32>
    %45 = tpu.matmul %42, %44, %cst_23 {dimension_numbers = #tpu.dot_dimension_numbers<[1], [0], [0], [1], [0, 0, 1, 1], [], []>} : vector<128x4xbf16>, vector<4x4xbf16>, vector<128x4xf32> -> vector<128x4xf32>
    %46 = arith.addf %35, %45 : vector<128x4xf32>
    %47 = vector.shape_cast %40 : vector<8x16x4xbf16> to vector<128x4xbf16>
    %c1_24 = arith.constant 1 : index
    %c0_25 = arith.constant 0 : index
    %c0_26 = arith.constant 0 : index
    %48 = vector.load %arg8[%c1_24, %c0_25, %c0_26] : memref<9x4x4xbf16, #tpu.memory_space<vmem>>, vector<1x4x4xbf16>
    %49 = vector.shape_cast %48 : vector<1x4x4xbf16> to vector<4x4xbf16>
    %cst_27 = arith.constant dense<0.000000e+00> : vector<128x4xf32>
    %50 = tpu.matmul %47, %49, %cst_27 {dimension_numbers = #tpu.dot_dimension_numbers<[1], [0], [0], [1], [0, 0, 1, 1], [], []>} : vector<128x4xbf16>, vector<4x4xbf16>, vector<128x4xf32> -> vector<128x4xf32>
    %51 = arith.addf %46, %50 : vector<128x4xf32>
    %52 = vector.shape_cast %41 : vector<8x16x4xbf16> to vector<128x4xbf16>
    %c2 = arith.constant 2 : index
    %c0_28 = arith.constant 0 : index
    %c0_29 = arith.constant 0 : index
    %53 = vector.load %arg8[%c2, %c0_28, %c0_29] : memref<9x4x4xbf16, #tpu.memory_space<vmem>>, vector<1x4x4xbf16>
    %54 = vector.shape_cast %53 : vector<1x4x4xbf16> to vector<4x4xbf16>
    %cst_30 = arith.constant dense<0.000000e+00> : vector<128x4xf32>
    %55 = tpu.matmul %52, %54, %cst_30 {dimension_numbers = #tpu.dot_dimension_numbers<[1], [0], [0], [1], [0, 0, 1, 1], [], []>} : vector<128x4xbf16>, vector<4x4xbf16>, vector<128x4xf32> -> vector<128x4xf32>
    %56 = arith.addf %51, %55 : vector<128x4xf32>
    %c1_31 = arith.constant 1 : index
    %c0_32 = arith.constant 0 : index
    %c0_33 = arith.constant 0 : index
    %57 = vector.load %arg11[%c1_31, %c0_32, %c0_33] : memref<10x17x4xbf16, #tpu.memory_space<vmem>>, vector<8x17x4xbf16>
    %58 = vector.extract_strided_slice %57 {offsets = [0, 0, 0], sizes = [8, 15, 4], strides = [1, 1, 1]} : vector<8x17x4xbf16> to vector<8x15x4xbf16>
    %59 = tpu.concatenate %36, %58 in 1 : vector<8x1x4xbf16>, vector<8x15x4xbf16> -> vector<8x16x4xbf16>
    %60 = vector.extract_strided_slice %57 {offsets = [0, 0, 0], sizes = [8, 16, 4], strides = [1, 1, 1]} : vector<8x17x4xbf16> to vector<8x16x4xbf16>
    %61 = vector.extract_strided_slice %57 {offsets = [0, 1, 0], sizes = [8, 16, 4], strides = [1, 1, 1]} : vector<8x17x4xbf16> to vector<8x16x4xbf16>
    %62 = vector.shape_cast %59 : vector<8x16x4xbf16> to vector<128x4xbf16>
    %c3 = arith.constant 3 : index
    %c0_34 = arith.constant 0 : index
    %c0_35 = arith.constant 0 : index
    %63 = vector.load %arg8[%c3, %c0_34, %c0_35] : memref<9x4x4xbf16, #tpu.memory_space<vmem>>, vector<1x4x4xbf16>
    %64 = vector.shape_cast %63 : vector<1x4x4xbf16> to vector<4x4xbf16>
    %cst_36 = arith.constant dense<0.000000e+00> : vector<128x4xf32>
    %65 = tpu.matmul %62, %64, %cst_36 {dimension_numbers = #tpu.dot_dimension_numbers<[1], [0], [0], [1], [0, 0, 1, 1], [], []>} : vector<128x4xbf16>, vector<4x4xbf16>, vector<128x4xf32> -> vector<128x4xf32>
    %66 = arith.addf %56, %65 : vector<128x4xf32>
    %67 = vector.shape_cast %60 : vector<8x16x4xbf16> to vector<128x4xbf16>
    %c4 = arith.constant 4 : index
    %c0_37 = arith.constant 0 : index
    %c0_38 = arith.constant 0 : index
    %68 = vector.load %arg8[%c4, %c0_37, %c0_38] : memref<9x4x4xbf16, #tpu.memory_space<vmem>>, vector<1x4x4xbf16>
    %69 = vector.shape_cast %68 : vector<1x4x4xbf16> to vector<4x4xbf16>
    %cst_39 = arith.constant dense<0.000000e+00> : vector<128x4xf32>
    %70 = tpu.matmul %67, %69, %cst_39 {dimension_numbers = #tpu.dot_dimension_numbers<[1], [0], [0], [1], [0, 0, 1, 1], [], []>} : vector<128x4xbf16>, vector<4x4xbf16>, vector<128x4xf32> -> vector<128x4xf32>
    %71 = arith.addf %66, %70 : vector<128x4xf32>
    %72 = vector.shape_cast %61 : vector<8x16x4xbf16> to vector<128x4xbf16>
    %c5 = arith.constant 5 : index
    %c0_40 = arith.constant 0 : index
    %c0_41 = arith.constant 0 : index
    %73 = vector.load %arg8[%c5, %c0_40, %c0_41] : memref<9x4x4xbf16, #tpu.memory_space<vmem>>, vector<1x4x4xbf16>
    %74 = vector.shape_cast %73 : vector<1x4x4xbf16> to vector<4x4xbf16>
    %cst_42 = arith.constant dense<0.000000e+00> : vector<128x4xf32>
    %75 = tpu.matmul %72, %74, %cst_42 {dimension_numbers = #tpu.dot_dimension_numbers<[1], [0], [0], [1], [0, 0, 1, 1], [], []>} : vector<128x4xbf16>, vector<4x4xbf16>, vector<128x4xf32> -> vector<128x4xf32>
    %76 = arith.addf %71, %75 : vector<128x4xf32>
    %c2_43 = arith.constant 2 : index
    %c0_44 = arith.constant 0 : index
    %c0_45 = arith.constant 0 : index
    %77 = vector.load %arg11[%c2_43, %c0_44, %c0_45] : memref<10x17x4xbf16, #tpu.memory_space<vmem>>, vector<8x17x4xbf16>
    %78 = vector.extract_strided_slice %77 {offsets = [0, 0, 0], sizes = [8, 15, 4], strides = [1, 1, 1]} : vector<8x17x4xbf16> to vector<8x15x4xbf16>
    %79 = tpu.concatenate %36, %78 in 1 : vector<8x1x4xbf16>, vector<8x15x4xbf16> -> vector<8x16x4xbf16>
    %80 = vector.extract_strided_slice %77 {offsets = [0, 0, 0], sizes = [8, 16, 4], strides = [1, 1, 1]} : vector<8x17x4xbf16> to vector<8x16x4xbf16>
    %81 = vector.extract_strided_slice %77 {offsets = [0, 1, 0], sizes = [8, 16, 4], strides = [1, 1, 1]} : vector<8x17x4xbf16> to vector<8x16x4xbf16>
    %82 = vector.shape_cast %79 : vector<8x16x4xbf16> to vector<128x4xbf16>
    %c6 = arith.constant 6 : index
    %c0_46 = arith.constant 0 : index
    %c0_47 = arith.constant 0 : index
    %83 = vector.load %arg8[%c6, %c0_46, %c0_47] : memref<9x4x4xbf16, #tpu.memory_space<vmem>>, vector<1x4x4xbf16>
    %84 = vector.shape_cast %83 : vector<1x4x4xbf16> to vector<4x4xbf16>
    %cst_48 = arith.constant dense<0.000000e+00> : vector<128x4xf32>
    %85 = tpu.matmul %82, %84, %cst_48 {dimension_numbers = #tpu.dot_dimension_numbers<[1], [0], [0], [1], [0, 0, 1, 1], [], []>} : vector<128x4xbf16>, vector<4x4xbf16>, vector<128x4xf32> -> vector<128x4xf32>
    %86 = arith.addf %76, %85 : vector<128x4xf32>
    %87 = vector.shape_cast %80 : vector<8x16x4xbf16> to vector<128x4xbf16>
    %c7 = arith.constant 7 : index
    %c0_49 = arith.constant 0 : index
    %c0_50 = arith.constant 0 : index
    %88 = vector.load %arg8[%c7, %c0_49, %c0_50] : memref<9x4x4xbf16, #tpu.memory_space<vmem>>, vector<1x4x4xbf16>
    %89 = vector.shape_cast %88 : vector<1x4x4xbf16> to vector<4x4xbf16>
    %cst_51 = arith.constant dense<0.000000e+00> : vector<128x4xf32>
    %90 = tpu.matmul %87, %89, %cst_51 {dimension_numbers = #tpu.dot_dimension_numbers<[1], [0], [0], [1], [0, 0, 1, 1], [], []>} : vector<128x4xbf16>, vector<4x4xbf16>, vector<128x4xf32> -> vector<128x4xf32>
    %91 = arith.addf %86, %90 : vector<128x4xf32>
    %92 = vector.shape_cast %81 : vector<8x16x4xbf16> to vector<128x4xbf16>
    %c8 = arith.constant 8 : index
    %c0_52 = arith.constant 0 : index
    %c0_53 = arith.constant 0 : index
    %93 = vector.load %arg8[%c8, %c0_52, %c0_53] : memref<9x4x4xbf16, #tpu.memory_space<vmem>>, vector<1x4x4xbf16>
    %94 = vector.shape_cast %93 : vector<1x4x4xbf16> to vector<4x4xbf16>
    %cst_54 = arith.constant dense<0.000000e+00> : vector<128x4xf32>
    %95 = tpu.matmul %92, %94, %cst_54 {dimension_numbers = #tpu.dot_dimension_numbers<[1], [0], [0], [1], [0, 0, 1, 1], [], []>} : vector<128x4xbf16>, vector<4x4xbf16>, vector<128x4xf32> -> vector<128x4xf32>
    %96 = arith.addf %91, %95 : vector<128x4xf32>
    %97 = vector.shape_cast %96 : vector<128x4xf32> to vector<1x8x16x4xf32>
    %c0_55 = arith.constant 0 : index
    %c0_56 = arith.constant 0 : index
    %c0_57 = arith.constant 0 : index
    %c0_58 = arith.constant 0 : index
    %98 = vector.load %arg9[%c0_55, %c0_56, %c0_57, %c0_58] : memref<1x8x16x4xf32, #tpu.memory_space<vmem>>, vector<1x8x16x4xf32>
    tpu.vector_store %arg9[%c0_55, %c0_56, %c0_57, %c0_58], %97 {strides = array<i32>} : memref<1x8x16x4xf32, #tpu.memory_space<vmem>>, vector<1x8x16x4xf32>,
    %cst_59 = arith.constant dense<0.000000e+00> : vector<4xf32>
    %99 = vector.multi_reduction <add>, %96, %cst_59 [0] : vector<128x4xf32> to vector<4xf32>
    %100 = vector.shape_cast %99 : vector<4xf32> to vector<1x4xf32>
    %101 = arith.mulf %96, %96 : vector<128x4xf32>
    %cst_60 = arith.constant dense<0.000000e+00> : vector<4xf32>
    %102 = vector.multi_reduction <add>, %101, %cst_60 [0] : vector<128x4xf32> to vector<4xf32>
    %103 = vector.shape_cast %102 : vector<4xf32> to vector<1x4xf32>
    %104 = tpu.concatenate %100, %103 in 0 : vector<1x4xf32>, vector<1x4xf32> -> vector<2x4xf32>
    %105 = vector.shape_cast %104 : vector<2x4xf32> to vector<1x1x2x4xf32>
    %c0_61 = arith.constant 0 : index
    %c0_62 = arith.constant 0 : index
    %c0_63 = arith.constant 0 : index
    %c0_64 = arith.constant 0 : index
    %106 = vector.load %arg10[%c0_61, %c0_62, %c0_63, %c0_64] : memref<1x1x2x4xf32, #tpu.memory_space<vmem>>, vector<1x1x2x4xf32>
    tpu.vector_store %arg10[%c0_61, %c0_62, %c0_63, %c0_64], %105 {strides = array<i32>} : memref<1x1x2x4xf32, #tpu.memory_space<vmem>>, vector<1x1x2x4xf32>,
    return
  }
  func.func @transform_0(%arg0: i32, %arg1: i32) -> (i32, i32, i32, i32) {
    %c0_i32 = arith.constant 0 : i32
    %c0_i32_0 = arith.constant 0 : i32
    %c0_i32_1 = arith.constant 0 : i32
    return %arg0, %arg1, %c0_i32, %c0_i32_0 : i32, i32, i32, i32
  }
  func.func @transform_1(%arg0: i32, %arg1: i32) -> (i32, i32, i32, i32) {
    %c4_i32 = arith.constant 4 : i32
    %0 = arith.muli %arg1, %c4_i32 : i32
    %c1_i32 = arith.constant 1 : i32
    %1 = arith.subi %0, %c1_i32 : i32
    %c0_i32 = arith.constant 0 : i32
    %2 = arith.maxsi %1, %c0_i32 : i32
    %c0_i32_0 = arith.constant 0 : i32
    %c0_i32_1 = arith.constant 0 : i32
    %c0_i32_2 = arith.constant 0 : i32
    return %arg0, %2, %c0_i32_0, %c0_i32_1 : i32, i32, i32, i32
  }
  func.func @transform_2(%arg0: i32, %arg1: i32) -> (i32, i32, i32, i32) {
    %c1_i32 = arith.constant 1 : i32
    %0 = arith.addi %arg1, %c1_i32 : i32
    %c4_i32 = arith.constant 4 : i32
    %1 = arith.muli %0, %c4_i32 : i32
    %c7_i32 = arith.constant 7 : i32
    %2 = arith.minsi %1, %c7_i32 : i32
    %c0_i32 = arith.constant 0 : i32
    %c0_i32_0 = arith.constant 0 : i32
    %c0_i32_1 = arith.constant 0 : i32
    return %arg0, %2, %c0_i32, %c0_i32_0 : i32, i32, i32, i32
  }
  func.func @transform_3(%arg0: i32, %arg1: i32) -> (i32, i32, i32, i32) {
    %c0_i32 = arith.constant 0 : i32
    %c0_i32_0 = arith.constant 0 : i32
    %c0_i32_1 = arith.constant 0 : i32
    return %arg0, %arg1, %c0_i32, %c0_i32_0 : i32, i32, i32, i32
  }
  func.func @transform_4(%arg0: i32, %arg1: i32) -> (i32, i32, i32, i32) {
    %c4_i32 = arith.constant 4 : i32
    %0 = arith.muli %arg1, %c4_i32 : i32
    %c1_i32 = arith.constant 1 : i32
    %1 = arith.subi %0, %c1_i32 : i32
    %c0_i32 = arith.constant 0 : i32
    %2 = arith.maxsi %1, %c0_i32 : i32
    %c0_i32_0 = arith.constant 0 : i32
    %c0_i32_1 = arith.constant 0 : i32
    %c0_i32_2 = arith.constant 0 : i32
    return %arg0, %2, %c0_i32_0, %c0_i32_1 : i32, i32, i32, i32
  }
  func.func @transform_5(%arg0: i32, %arg1: i32) -> (i32, i32, i32, i32) {
    %c1_i32 = arith.constant 1 : i32
    %0 = arith.addi %arg1, %c1_i32 : i32
    %c4_i32 = arith.constant 4 : i32
    %1 = arith.muli %0, %c4_i32 : i32
    %c7_i32 = arith.constant 7 : i32
    %2 = arith.minsi %1, %c7_i32 : i32
    %c0_i32 = arith.constant 0 : i32
    %c0_i32_0 = arith.constant 0 : i32
    %c0_i32_1 = arith.constant 0 : i32
    return %arg0, %2, %c0_i32, %c0_i32_0 : i32, i32, i32, i32
  }
  func.func @transform_6(%arg0: i32, %arg1: i32) -> (i32, i32, i32) {
    %c0_i32 = arith.constant 0 : i32
    %c0_i32_0 = arith.constant 0 : i32
    %c0_i32_1 = arith.constant 0 : i32
    %c0_i32_2 = arith.constant 0 : i32
    return %c0_i32, %c0_i32_0, %c0_i32_1 : i32, i32, i32
  }
  func.func @transform_7(%arg0: i32, %arg1: i32) -> (i32, i32, i32, i32) {
    %c0_i32 = arith.constant 0 : i32
    %c0_i32_0 = arith.constant 0 : i32
    %c0_i32_1 = arith.constant 0 : i32
    return %arg0, %arg1, %c0_i32, %c0_i32_0 : i32, i32, i32, i32
  }
  func.func @transform_8(%arg0: i32, %arg1: i32) -> (i32, i32, i32, i32) {
    %c0_i32 = arith.constant 0 : i32
    %c0_i32_0 = arith.constant 0 : i32
    %c0_i32_1 = arith.constant 0 : i32
    return %arg0, %arg1, %c0_i32, %c0_i32_0 : i32, i32, i32, i32
  }
}

</mosaic_0001>

<bundles_post_ra>
// kernel: tpu_custom_call.1
= control target key start
LH: loop header
LB: loop body
LE: loop exit
PB: predicated region body
PF: predicated region fallthrough
CT: control target
= control target key end

     0   :  { %s5497_s0 = inlined_call_operand.vmem [shape: bf16[2,8,16,4], index: 0, kind: input, shape index: {}]   ;;  %s5498_s1 = inlined_call_operand.vmem [shape: bf16[2,8,16,4], index: 1, kind: input, shape index: {}]   ;;  %s5499_s2 = inlined_call_operand.vmem [shape: bf16[2,8,16,4], index: 2, kind: input, shape index: {}]   ;;  %s5500_s3 = inlined_call_operand.vmem [shape: s32[2,8,16,4], index: 3, kind: input, shape index: {}]   ;;  %s5501_s4 = inlined_call_operand.vmem [shape: s32[2,8,16,4], index: 4, kind: input, shape index: {}]   ;;  %s5502_s5 = inlined_call_operand.vmem [shape: s32[2,8,16,4], index: 5, kind: input, shape index: {}]   ;;  %s5503_s6 = inlined_call_operand.vmem [shape: bf16[9,4,4], index: 6, kind: input, shape index: {}]   ;;  %s5504_s7 = inlined_call_operand.vmem [shape: f32[2,16,16,4], index: 7, kind: output, shape index: {0}]   ;;  %s5505_s8 = inlined_call_operand.hbm [shape: f32[2,2,2,4], index: 8, kind: output, shape index: {1}]  }
   0x1   :  { %5549 = sst [smem:[#allocation37_spill]] %s5498_s1 }
   0x2   :  { %5550 = sst [smem:[#allocation38_spill]] %s5505_s8 }
   0x3   :  { %14 = vsyncpa [#allocation4], 0 }
   0x4   :  { %16 = vsyncpa [#allocation4 + $0x1], 0  ;;  %s4362_s27 = smov 0   ;;  %s4364_s28 = smov 0  }
   0x5   :  { %s4366_s29 = smov 0   ;;  %s4368_s30 = smov 0  }
   0x6   :  { %s4370_s9 = smov 0   ;;  %s4372_s10 = smov 0  }
   0x7   :  { %s4374_s11 = smov 0   ;;  %s4376_s12 = smov 0  }
   0x8 LB: > { %5551 = sst [smem:[#allocation6_spill]] %s4285_s27  ;;  %s3518_s13 = sadd.s32 4294967295, %s4313_s12   ;;  %s4313_s12 = sphi %s4376_s12, %s22_s12   ;;  %s4309_s11 = sphi %s4374_s11, %s5633_s11   ;;  %s4305_s10 = sphi %s4372_s10, %s5632_s10   ;;  %s4301_s9 = sphi %s4370_s9, %s5631_s9   ;;  %s4297_s30 = sphi %s4368_s30, %s5630_s30   ;;  %s4293_s29 = sphi %s4366_s29, %s5629_s29   ;;  %s4289_s28 = sphi %s4364_s28, %s5628_s28   ;;  %s4285_s27 = sphi %s4362_s27, %s5627_s27  }
   0x9   : > { %5552 = sst [smem:[#allocation7_spill]] %s4289_s28  ;;  %s3519_s14 = sadd.s32 4294967294, %s4313_s12  }
   0xa   : > { %5553 = sst [smem:[#allocation8_spill]] %s4293_s29  ;;  %s31_s15 = sadd.s32 1, %s4305_s10 }
   0xb   : > { %5554 = sst [smem:[#allocation9_spill]] %s4301_s9  ;;  %p32_p0 = scmp.ge.s32.totalorder %s31_s15, 2 }
   0xc   : > { %5555 = sst [smem:[#allocation10_spill]] %s4305_s10  ;;  %s34_s16 = sadd.s32 1, %s4309_s11 }
   0xd   : > { %5556 = sst [smem:[#allocation11_spill]] %s4309_s11  ;;  %p302_p1 = scmp.ne.s32.totalorder %s4293_s29, %s4289_s28 }
   0xe   : > { %5557 = sst [smem:[#allocation12_spill]] %s4313_s12  ;;  %p303_p2 = scmp.eq.s32.totalorder %s3518_s13, 3 }
   0xf   : > { %s5635_s15 = smov (%p32_p0, %s31_s15), 0  ;;  %s5637_s16 = smov (!%p32_p0, %s34_s16), %s4309_s11 }
  0x10   : > { %5558 = sst [smem:[#allocation13_spill]] %s5635_s15  ;;  %s288_s17 = ssub.s32 %s4305_s10, %s5635_s15 }
  0x11   : > { %p4413_p3 = por %p303_p2, %p302_p1  ;;  %p36_p4 = scmp.ge.s32.totalorder %s5637_s16, 2 }
  0x12   : > { %p308_p5 = scmp.ne.s32.totalorder %s4289_s28, %s4285_s27  ;;  %p309_p6 = scmp.eq.s32.totalorder %s3519_s14, 3 }
  0x13   : > { %s5559_s18 = scalar_select %p4413_p3, 1, 0 }
  0x14   : > { %p3534_p7 = scmp.ge.s32.totalorder %s4313_s12, 1  ;;  %s5639_s16 = smov (%p36_p4, %s5637_s16), 0 }
  0x15   : > { %5560 = sst [smem:[#allocation14_spill]] %s5559_s18  ;;  %p4422_p8 = por %p309_p6, %p308_p5 }
  0x16   : > { %5561 = sst [smem:[#allocation15_spill]] %s5639_s16  ;;  %p438_p9 = scmp.lt.s32.totalorder %s4313_s12, 5 }
  0x17   : > { %s5562_s19 = scalar_select %p4422_p8, 1, 0 }
  0x18   : > { %s287_s20 = ssub.s32 %s4309_s11, %s5639_s16  ;;  %s292_s21 = sadd.s32 1, %s4293_s29 }
  0x19   : > { %5563 = sst [smem:[#allocation16_spill]] %s5562_s19  ;;  %s289_s22 = sor.u32 %s288_s17, %s287_s20 }
  0x1a   : > { %p439_p10 = pnand %p3534_p7, %p438_p9  ;;  %p290_p11 = scmp.eq.s32.totalorder %s289_s22, 0 }
  0x1c   : > { %s4431_s23 = scalar_select %p290_p11, %s4293_s29, %s292_s21  }
  0x1d   : > { %442 = sbr.rel (%p439_p10) target bundleno = 519 (0x207), region = 48 }
  0x1e   : > { %5564 = sst [smem:[#allocation17_spill]] %s4431_s23 }
  0x24   : > { %vm652_vm0 = vcmask 27648   ;;  %s5506_s24 = sand.u32 1, %s4289_s28   ;;  %vm655_vm1 = vcmask 24576   ;;  %vm656_vm2 = vsmask.f32 256  ;;  %v4315_v0 = vmov 0  }
  0x25   : > { %661 = vst.msk [vmem:[#allocation2 + $0xc] sm:$0xf] %vm652_vm0, %v4315_v0  ;;  %653 = vst.msk [vmem:[#allocation2] sm:$0xf] %vm652_vm0, %v4315_v0  ;;  %s4456_s25 = sshll.u32 %s5506_s24, 1  ;;  %s4465_s26 = sshll.u32 %s4297_s30, 2  ;;  %v722_v22 = vlaneseq }
  0x26   : > { %654 = vst.msk [vmem:[#allocation2 + $0x4] sm:$0xf] %vm652_vm0, %v4315_v0  ;;  %662 = vst.msk [vmem:[#allocation2 + $0x10] sm:$0xf] %vm652_vm0, %v4315_v0  ;;  %v658_v2 = vld [vmem:[#allocation2 + $0x8] sm:$0x1] }
  0x27   : > { %666 = vst.msk [vmem:[#allocation2 + $0x18] sm:$0xf] %vm652_vm0, %v4315_v0  ;;  %667 = vst.msk [vmem:[#allocation2 + $0x1c] sm:$0xf] %vm652_vm0, %v4315_v0  ;;  %v663_v3 = vld [vmem:[#allocation2 + $0x14] sm:$0x1] }
  0x28   : > { %671 = vst.msk [vmem:[#allocation2 + $0x24] sm:$0xf] %vm652_vm0, %v4315_v0  ;;  %672 = vst.msk [vmem:[#allocation2 + $0x28] sm:$0xf] %vm652_vm0, %v4315_v0  ;;  %v668_v6 = vld [vmem:[#allocation2 + $0x20] sm:$0x1] }
  0x29   : > { %676 = vst.msk [vmem:[#allocation2 + $0x30] sm:$0xf] %vm652_vm0, %v4315_v0  ;;  %677 = vst.msk [vmem:[#allocation2 + $0x34] sm:$0xf] %vm652_vm0, %v4315_v0  ;;  %p550_p12 = scmp.lt.s32.totalorder %s4301_s9, 1  ;;  %p552_p13 = scmp.lt.s32.totalorder %s4465_s26, 7 }
  0x2a   : > { %681 = vst.msk [vmem:[#allocation2 + $0x3c] sm:$0xf] %vm652_vm0, %v4315_v0  ;;  %682 = vst.msk [vmem:[#allocation2 + $0x40] sm:$0xf] %vm652_vm0, %v4315_v0  ;;  %v673_v8 = vld [vmem:[#allocation2 + $0x2c] sm:$0x1] }
  0x2b   : > { %686 = vst.msk [vmem:[#allocation2 + $0x48] sm:$0xf] %vm652_vm0, %v4315_v0  ;;  %687 = vst.msk [vmem:[#allocation2 + $0x4c] sm:$0xf] %vm652_vm0, %v4315_v0  ;;  %v678_v9 = vld [vmem:[#allocation2 + $0x38] sm:$0x1] }
  0x2c   : > { %691 = vst.msk [vmem:[#allocation2 + $0x54] sm:$0xf] %vm652_vm0, %v4315_v0  ;;  %692 = vst.msk [vmem:[#allocation2 + $0x58] sm:$0xf] %vm652_vm0, %v4315_v0  ;;  %v683_v12 = vld [vmem:[#allocation2 + $0x44] sm:$0x1] }
  0x2d   : > { %696 = vst.msk [vmem:[#allocation2 + $0x60] sm:$0xf] %vm652_vm0, %v4315_v0  ;;  %697 = vst.msk [vmem:[#allocation2 + $0x64] sm:$0xf] %vm652_vm0, %v4315_v0  ;;  %v688_v13 = vld [vmem:[#allocation2 + $0x50] sm:$0x1] }
  0x2e   : > { %701 = vst.msk [vmem:[#allocation2 + $0x6c] sm:$0xf] %vm652_vm0, %v4315_v0  ;;  %702 = vst.msk [vmem:[#allocation2 + $0x70] sm:$0xf] %vm652_vm0, %v4315_v0  ;;  %v693_v16 = vld [vmem:[#allocation2 + $0x5c] sm:$0x1] }
  0x2f   : > { %vm4460_vm3 = vmand %vm655_vm1, %vm656_vm2  ;;  %v698_v17 = vld [vmem:[#allocation2 + $0x68] sm:$0x1]  ;;  %v703_v20 = vld [vmem:[#allocation2 + $0x74] sm:$0x1]  ;;  %s4490_s13 = scalar_select %p550_p12, %s4301_s9, 1  ;;  %v4505_v23 = vshrl.u32 %v722_v22, 7 }
  0x30   : > { %v659_v4 = vsel %vm4460_vm3, 0, %v658_v2  ;;  %v664_v5 = vsel %vm4460_vm3, 0, %v663_v3  ;;  %v669_v7 = vsel %vm4460_vm3, 0, %v668_v6  ;;  %v674_v10 = vsel %vm4460_vm3, 0, %v673_v8  ;;  %s553_s14 = scalar_select %p552_p13, %s4465_s26, 7 }
  0x31   : > { %660 = vst [vmem:[#allocation2 + $0x8] sm:$0x1] %v659_v4  ;;  %665 = vst [vmem:[#allocation2 + $0x14] sm:$0x1] %v664_v5  ;;  %v679_v11 = vsel %vm4460_vm3, 0, %v678_v9  ;;  %v684_v14 = vsel %vm4460_vm3, 0, %v683_v12 }
  0x32   : > { %670 = vst [vmem:[#allocation2 + $0x20] sm:$0x1] %v669_v7  ;;  %675 = vst [vmem:[#allocation2 + $0x2c] sm:$0x1] %v674_v10  ;;  %v689_v15 = vsel %vm4460_vm3, 0, %v688_v13  ;;  %v694_v18 = vsel %vm4460_vm3, 0, %v693_v16 }
  0x33   : > { %680 = vst [vmem:[#allocation2 + $0x38] sm:$0x1] %v679_v11  ;;  %685 = vst [vmem:[#allocation2 + $0x44] sm:$0x1] %v684_v14  ;;  %v699_v19 = vsel %vm4460_vm3, 0, %v698_v17  ;;  %v704_v21 = vsel %vm4460_vm3, 0, %v703_v20 }
  0x34   : > { %690 = vst [vmem:[#allocation2 + $0x50] sm:$0x1] %v689_v15  ;;  %695 = vst [vmem:[#allocation2 + $0x5c] sm:$0x1] %v694_v18  ;;  %s3538_s17 = sshll.u32 %s4490_s13, 4  ;;  %s3541_s20 = sadd.s32 4294967295, %s4465_s26 }
  0x35   : > { %700 = vst [vmem:[#allocation2 + $0x68] sm:$0x1] %v699_v19  ;;  %705 = vst [vmem:[#allocation2 + $0x74] sm:$0x1] %v704_v21  ;;  %s3537_s21 = sshll.u32 %s553_s14, 1  ;;  %p562_p0 = scmp.gt.s32.totalorder %s3541_s20, 0 }
  0x36   : > { %p3542_p1 = scmp.lt.s32.totalorder %s3541_s20, 7  ;;  %s3732_s22 = sadd.s32 4, %s4465_s26  ;;  %v4531_v24 = vadd.s32 8, %v4505_v23 }
  0x37   : > { %s556_s24 = sadd.s32 %s3538_s17, %s3537_s21  ;;  %p579_p2 = scmp.lt.s32.totalorder %s3732_s22, 7 }
  0x38   : > { %s5641_s20 = smov (!%p562_p0, %s3541_s20), 0  ;;  %s3539_s16 = sshll.u32 %s556_s24, 2 }
  0x39   : > { %s5643_s22 = smov (!%p579_p2, %s3732_s22), 7  ;;  %s5645_s20 = smov (!%p3542_p1, %s5641_s20), 7 }
  0x3a   : > { %s5647_s22 = smov (!%p579_p2, %s5643_s22), 7  ;;  %s3547_s15 = sshll.u32 %s5645_s20, 1 }
  0x3b   : > { %s570_s11 = sadd.s32 %s3547_s15, %s3538_s17  ;;  %s3554_s10 = sshll.u32 %s5647_s22, 1 }
  0x3c   : > { %s3549_s23 = sshll.u32 %s570_s11, 2  ;;  %s587_s29 = sadd.s32 %s3554_s10, %s3538_s17 }
  0x3d   : > { %s5567_s1 = sld [smem:[#allocation37_spill]]  ;;  %s3556_s26 = sshll.u32 %s587_s29, 2 }
  0x3e   : > { %s4510_s8 = scalar_lea.vmem %s5499_s2, %s3556_s26  ;;  %s3560_s18 = sshll.u32 %s556_s24, 3 }
  0x3f   : > { %s3570_s20 = sshll.u32 %s570_s11, 3  ;;  %s3577_s15 = sshll.u32 %s587_s29, 3 }
  0x40   : > { %s4515_s10 = scalar_lea.vmem %s5501_s4, %s3570_s20  ;;  %s4525_s9 = scalar_lea.vmem %s5500_s3, %s3560_s18 }
  0x41   : > { %s4528_s12 = sshll.u32 %s4297_s30, 3  ;;  %s4536_s11 = scalar_lea.vmem %s5497_s0, %s3539_s16  ;;  %v714_v30 = vld [vmem:[%s4525_s9] sm:$0xff]  ;;  %v715_v31 = vld [vmem:[%s4525_s9 + $0x8] sm:$0xff]  ;;  %v716_v45 = vld [vmem:[%s4525_s9 + $0x10] sm:$0xff] }
  0x42   : > { %p642_p4 = scmp.lt.s32.totalorder %s4528_s12, 15  ;;  %v725_v25 = vstv %s4528_s12  ;;  %v706_v33 = vld [vmem:[%s4536_s11] sm:$0xf]  ;;  %v707_v42 = vld [vmem:[%s4536_s11 + $0x4] sm:$0xf]  ;;  %v717_v46 = vld [vmem:[%s4525_s9 + $0x18] sm:$0xff] }
  0x43   : > { %s4503_s14 = scalar_lea.vmem %s5567_s1, %s3549_s23  ;;  %s4520_s23 = scalar_lea.vmem %s5502_s5, %s3577_s15  ;;  %v733_v26 = vmul.u32 16, %v725_v25  ;;  %v729_v27 = vadd.s32 1, %v725_v25  ;;  %v726_v28 = vadd.s32 2, %v725_v25  ;;  %v727_v29 = vadd.s32 4, %v725_v25  ;;  %v718_v50 = vld [vmem:[%s4525_s9 + $0x20] sm:$0xff]  ;;  %v719_v53 = vld [vmem:[%s4525_s9 + $0x28] sm:$0xff] }
  0x44   : > { %s3580_s1 = sshll.u32 %s4490_s13, 5  ;;  %v4544_v32 = vadd.s32 6, %v725_v25  ;;  %v708_v56 = vld [vmem:[%s4536_s11 + $0x8] sm:$0xf]  ;;  %v709_v59 = vld [vmem:[%s4536_s11 + $0xc] sm:$0xf] }
  0x45   : > { %s643_s18 = scalar_select %p642_p4, %s4528_s12, 15  ;;  %v741_v34 = vadd.s32 %v733_v26, %v4505_v23  ;;  %v742_v35 = vadd.s32 %v733_v26, %v4531_v24  ;;  %v734_v36 = vmul.u32 16, %v729_v27  ;;  %v735_v37 = vmul.u32 16, %v726_v28  ;;  %v710_v3 = vld [vmem:[%s4536_s11 + $0x10] sm:$0xf]  ;;  %v721_v10 = vld [vmem:[%s4525_s9 + $0x38] sm:$0xff] }
  0x46   : > { %v730_v38 = vadd.s32 1, %v726_v28  ;;  %v737_v39 = vmul.u32 16, %v727_v29  ;;  %v731_v40 = vadd.s32 1, %v727_v29  ;;  %v739_v41 = vmul.u32 16, %v4544_v32  ;;  %v720_v6 = vld [vmem:[%s4525_s9 + $0x30] sm:$0xff]  ;;  %s548_s9 = scalar_lea.vmem [#allocation3], %s4456_s25 }
  0x47   : > { %s3579_s16 = sshll.u32 %s643_s18, 1  ;;  %vm757_vm4 = vcmp.eq.s32.totalorder %v714_v30, %v741_v34  ;;  %vm758_vm5 = vcmp.eq.s32.totalorder %v715_v31, %v742_v35  ;;  %v743_v43 = vadd.s32 %v734_v36, %v4505_v23  ;;  %v744_v44 = vadd.s32 %v734_v36, %v4531_v24  ;;  %v711_v9 = vld [vmem:[%s4536_s11 + $0x14] sm:$0xf]  ;;  %v712_v17 = vld [vmem:[%s4536_s11 + $0x18] sm:$0xf]  ;;  %p3583_p5 = scmp.le.s32.totalorder %s4297_s30, 0 }
  0x48   : > { %s646_s24 = sadd.s32 %s3580_s1, %s3579_s16  ;;  %vm773_vm6 = vmpackc.low %vm757_vm4, %vm757_vm4  ;;  %v745_v47 = vadd.s32 %v735_v37, %v4505_v23  ;;  %v746_v48 = vadd.s32 %v735_v37, %v4531_v24  ;;  %v736_v49 = vmul.u32 16, %v730_v38  ;;  %v749_v51 = vadd.s32 %v737_v39, %v4505_v23  ;;  %v713_v19 = vld [vmem:[%s4536_s11 + $0x1c] sm:$0xf]  ;;  %s3584_s15 = sadd.s32 (!%p3583_p5), 4294967295, %s4528_s12  ;;  %v828_v27 = vld [vmem:[%s4515_s10] sm:$0xff] (!%p3583_p5) }
  0x49   : > { %s3581_s13 = sshll.u32 %s646_s24, 3  ;;  %v789_v52 = vsel %vm773_vm6, %v706_v33, 0  ;;  %vm774_vm7 = vmpackc.low %vm758_vm5, %vm758_vm5  ;;  %vm759_vm8 = vcmp.eq.s32.totalorder %v714_v30, %v743_v43  ;;  %vm760_vm9 = vcmp.eq.s32.totalorder %v715_v31, %v744_v44  ;;  %v750_v54 = vadd.s32 %v737_v39, %v4531_v24  ;;  %s3585_s22 = sshll.u32 (!%p3583_p5), %s3584_s15, 4  ;;  %v829_v29 = vld [vmem:[%s4515_s10 + $0x8] sm:$0xff] (!%p3583_p5) }
  0x4a   : > { %s4562_s20 = scalar_lea.vmem %s5504_s7, %s3581_s13  ;;  %806 = vst.msk [vmem:[#allocation2 + $0xc] sm:$0xf] %vm652_vm0, %v789_v52  ;;  %v790_v55 = vsel %vm774_vm7, %v707_v42, 0  ;;  %vm775_vm10 = vmpackc.low %vm759_vm8, %vm759_vm8  ;;  %vm761_vm11 = vcmp.eq.s32.totalorder %v716_v45, %v745_v47  ;;  %vm762_vm12 = vcmp.eq.s32.totalorder %v717_v46, %v746_v48  ;;  %v747_v57 = vadd.s32 %v736_v49, %v4505_v23 }
  0x4b   : > { %807 = vst.msk [vmem:[#allocation2 + $0x10] sm:$0xf] %vm652_vm0, %v790_v55  ;;  %v791_v58 = vsel %vm775_vm10, %v706_v33, 0  ;;  %vm776_vm13 = vmpackc.low %vm760_vm9, %vm760_vm9  ;;  %v748_v60 = vadd.s32 %v736_v49, %v4531_v24  ;;  %vm765_vm14 = vcmp.eq.s32.totalorder %v718_v50, %v749_v51  ;;  %vm766_vm3 = vcmp.eq.s32.totalorder %v719_v53, %v750_v54  ;;  %v827_v33 = vld [vmem:[%s4503_s14 + $0x4] sm:$0xf] (!%p3583_p5) }
  0x4c   : > { %808 = vst.msk [vmem:[#allocation2 + $0x18] sm:$0xf] %vm652_vm0, %v791_v58  ;;  %v792_v61 = vsel %vm776_vm13, %v707_v42, 0  ;;  %vm777_vm15 = vmpackc.low %vm761_vm11, %vm761_vm11  ;;  %vm763_vm1 = vcmp.eq.s32.totalorder %v716_v45, %v747_v57  ;;  %v738_v62 = vmul.u32 16, %v731_v40  ;;  %v753_v0 = vadd.s32 %v739_v41, %v4505_v23 }
  0x4d   : > { %809 = vst.msk [vmem:[#allocation2 + $0x1c] sm:$0xf] %vm652_vm0, %v792_v61  ;;  %v793_v63 = vsel %vm777_vm15, %v708_v56, 0  ;;  %vm778_vm4 = vmpackc.low %vm762_vm12, %vm762_vm12  ;;  %vm764_vm5 = vcmp.eq.s32.totalorder %v717_v46, %v748_v60  ;;  %v732_v1 = vadd.s32 1, %v4544_v32  ;;  %v754_v7 = vadd.s32 %v739_v41, %v4531_v24  ;;  %v826_v32 = vld [vmem:[%s4503_s14] sm:$0xf] (!%p3583_p5) }
  0x4e   : > { %810 = vst.msk [vmem:[#allocation2 + $0x24] sm:$0xf] %vm652_vm0, %v793_v63  ;;  %v794_v2 = vsel %vm778_vm4, %v709_v59, 0  ;;  %vm779_vm6 = vmpackc.low %vm763_vm1, %vm763_vm1  ;;  %v751_v4 = vadd.s32 %v738_v62, %v4505_v23  ;;  %v752_v5 = vadd.s32 %v738_v62, %v4531_v24  ;;  %vm769_vm12 = vcmp.eq.s32.totalorder %v720_v6, %v753_v0 }
  0x4f   : > { %811 = vst.msk [vmem:[#allocation2 + $0x28] sm:$0xf] %vm652_vm0, %v794_v2  ;;  %v795_v8 = vsel %vm779_vm6, %v708_v56, 0  ;;  %vm780_vm7 = vmpackc.low %vm764_vm5, %vm764_vm5  ;;  %v740_v11 = vmul.u32 16, %v732_v1  ;;  %v832_v28 = vstv (!%p3583_p5), %s3585_s22 }
  0x50   : > { %812 = vst.msk [vmem:[#allocation2 + $0x30] sm:$0xf] %vm652_vm0, %v795_v8  ;;  %v796_v12 = vsel %vm780_vm7, %v709_v59, 0  ;;  %vm781_vm8 = vmpackc.low %vm765_vm14, %vm765_vm14  ;;  %vm767_vm9 = vcmp.eq.s32.totalorder %v718_v50, %v751_v4  ;;  %vm768_vm10 = vcmp.eq.s32.totalorder %v719_v53, %v752_v5  ;;  %vm770_vm14 = vcmp.eq.s32.totalorder %v721_v10, %v754_v7 }
  0x51   : > { %813 = vst.msk [vmem:[#allocation2 + $0x34] sm:$0xf] %vm652_vm0, %v796_v12  ;;  %v797_v13 = vsel %vm781_vm8, %v710_v3, 0  ;;  %vm782_vm11 = vmpackc.low %vm766_vm3, %vm766_vm3  ;;  %v755_v14 = vadd.s32 %v740_v11, %v4505_v23  ;;  %v756_v15 = vadd.s32 %v740_v11, %v4531_v24  ;;  %v833_v30 = vadd.s32 (!%p3583_p5), %v832_v28, %v4505_v23 }
  0x52   : > { %814 = vst.msk [vmem:[#allocation2 + $0x3c] sm:$0xf] %vm652_vm0, %v797_v13  ;;  %v798_v16 = vsel %vm782_vm11, %v711_v9, 0  ;;  %vm783_vm13 = vmpackc.low %vm767_vm9, %vm767_vm9  ;;  %v834_v31 = vadd.s32 (!%p3583_p5), %v832_v28, %v4531_v24 }
  0x53   : > { %815 = vst.msk [vmem:[#allocation2 + $0x40] sm:$0xf] %vm652_vm0, %v798_v16  ;;  %v799_v18 = vsel %vm783_vm13, %v710_v3, 0  ;;  %vm784_vm15 = vmpackc.low %vm768_vm10, %vm768_vm10  ;;  %vm771_vm1 = vcmp.eq.s32.totalorder %v720_v6, %v755_v14  ;;  %vm772_vm4 = vcmp.eq.s32.totalorder %v721_v10, %v756_v15  ;;  %825 = sbr.rel (%p3583_p5) target bundleno = 92 (0x5c), region = 52  ;;  %vm835_vm8 = vcmp.eq.s32.totalorder (!%p3583_p5), %v828_v27, %v833_v30 }
  0x54   : > { %816 = vst.msk [vmem:[#allocation2 + $0x48] sm:$0xf] %vm652_vm0, %v799_v18  ;;  %v800_v20 = vsel %vm784_vm15, %v711_v9, 0  ;;  %vm785_vm3 = vmpackc.low %vm769_vm12, %vm769_vm12  ;;  %vm836_vm9 = vcmp.eq.s32.totalorder (!%p3583_p5), %v829_v29, %v834_v31 }
  0x55   : > { %817 = vst.msk [vmem:[#allocation2 + $0x4c] sm:$0xf] %vm652_vm0, %v800_v20  ;;  %v801_v21 = vsel %vm785_vm3, %v712_v17, 0  ;;  %vm786_vm5 = vmpackc.low %vm770_vm14, %vm770_vm14 }
  0x56   : > { %818 = vst.msk [vmem:[#allocation2 + $0x54] sm:$0xf] %vm652_vm0, %v801_v21  ;;  %v802_v22 = vsel %vm786_vm5, %v713_v19, 0  ;;  %vm787_vm6 = vmpackc.low %vm771_vm1, %vm771_vm1 }
  0x57   : > { %819 = vst.msk [vmem:[#allocation2 + $0x58] sm:$0xf] %vm652_vm0, %v802_v22  ;;  %v803_v25 = vsel %vm787_vm6, %v712_v17, 0  ;;  %vm788_vm7 = vmpackc.low %vm772_vm4, %vm772_vm4 }
  0x58   : > { %820 = vst.msk [vmem:[#allocation2 + $0x60] sm:$0xf] %vm652_vm0, %v803_v25  ;;  %v804_v26 = vsel %vm788_vm7, %v713_v19, 0  ;;  %vm837_vm10 = vmpackc.low (!%p3583_p5), %vm835_vm8, %vm835_vm8 }
  0x59   : > { %821 = vst.msk [vmem:[#allocation2 + $0x64] sm:$0xf] %vm652_vm0, %v804_v26  ;;  %v839_v34 = vsel (!%p3583_p5), %vm837_vm10, %v826_v32, 0  ;;  %vm838_vm11 = vmpackc.low (!%p3583_p5), %vm836_vm9, %vm836_vm9 }
  0x5a   : > { %841 = vst.msk [vmem:[#allocation2] sm:$0xf] %vm652_vm0, %v839_v34  ;;  %v840_v35 = vsel %vm838_vm11, %v827_v33, 0 }
  0x5b   : > { %842 = vst.msk [vmem:[#allocation2 + $0x4] sm:$0xf] %vm652_vm0, %v840_v35 }
  0x5c PF: > { %p3586_p6 = scmp.ge.s32.totalorder %s4297_s30, 1 }
  0x5d   : > { %s3739_s10 = sshll.u32 (!%p3586_p6), %s4297_s30, 7  ;;  %v849_v36 = vld [vmem:[%s4520_s23] sm:$0xff] (!%p3586_p6)  ;;  %v850_v38 = vld [vmem:[%s4520_s23 + $0x8] sm:$0xff] (!%p3586_p6) }
  0x5e   : > { %846 = sbr.rel (%p3586_p6) target bundleno = 103 (0x67), region = 56  ;;  %s3738_s14 = sadd.s32 (!%p3586_p6), 128, %s3739_s10  ;;  %v847_v41 = vld [vmem:[%s4510_s8] sm:$0xf] (!%p3586_p6)  ;;  %v848_v42 = vld [vmem:[%s4510_s8 + $0x4] sm:$0xf] (!%p3586_p6) }
  0x5f   : > { %v853_v37 = vstv (!%p3586_p6), %s3738_s14 }
  0x60   : > { %v854_v39 = vadd.s32 (!%p3586_p6), %v853_v37, %v4505_v23  ;;  %v855_v40 = vadd.s32 (!%p3586_p6), %v853_v37, %v4531_v24 }
  0x62   : > { %vm856_vm12 = vcmp.eq.s32.totalorder (!%p3586_p6), %v849_v36, %v854_v39  ;;  %vm857_vm13 = vcmp.eq.s32.totalorder (!%p3586_p6), %v850_v38, %v855_v40 }
  0x63   : > { %vm858_vm14 = vmpackc.low (!%p3586_p6), %vm856_vm12, %vm856_vm12 }
  0x64   : > { %v860_v43 = vsel (!%p3586_p6), %vm858_vm14, %v847_v41, 0  ;;  %vm859_vm15 = vmpackc.low (!%p3586_p6), %vm857_vm13, %vm857_vm13 }
  0x65   : > { %863 = vst.msk [vmem:[#allocation2 + $0x6c] sm:$0xf] %vm652_vm0, %v860_v43  ;;  %v861_v44 = vsel %vm859_vm15, %v848_v42, 0 }
  0x66   : > { %864 = vst.msk [vmem:[#allocation2 + $0x70] sm:$0xf] %vm652_vm0, %v861_v44 }
  0x67 PF: > { %v3596_v45 = vld [vmem:[%s5503_s6 + $0x2] sm:$0x3]  ;;  %vm1023_vm1 = vcmask 1041408   ;;  %v4632_v23 = vld [vmem:[%s5503_s6 + $0x8] sm:$0x3]  ;;  %vm1006_vm3 = vcmask 31744  }
  0x68   : > { %4113 = vmatprep.subr.msk.bf16.mxu1 %vm1023_vm1, %v3596_v45  ;;  %4117 = vmatprep.subr.msk.bf16.mxu0 %vm1023_vm1, %v4632_v23  ;;  %v1025_v24 = vsel %vm1023_vm1, %v3596_v45, 0  ;;  %v4640_v46 = vsel %vm1023_vm1, %v4632_v23, 0  ;;  %v865_v47 = vld [vmem:[#allocation2] sm:$0xf]  ;;  %v866_v48 = vld [vmem:[#allocation2 + $0x4] sm:$0xf] }
  0x69   : > { %5568 = vst [vmem:[#allocation18_spill] sm:$0xff] %v4640_v46  ;;  %3822 = vmatpush3.bf16.msra.mxu1 %v1025_v24  ;;  %3894 = vmatpush3.bf16.msra.mxu0 %v4640_v46  ;;  %v4643_v49 = vcombine.low %v865_v47, %v866_v48  ;;  %v1252_v50 = vshrl.u32 %v865_v47, 16  ;;  %v1255_v51 = vshll.u32 %v865_v47, 16  ;;  %v1261_v52 = vshll.u32 %v866_v48, 16  ;;  %v1609_v53 = vld [vmem:[#allocation2 + $0xc] sm:$0xf] }
  0x6a   : > { %v1265_v54 = vshrl.u32 %v866_v48, 16  ;;  %v1610_v55 = vld [vmem:[#allocation2 + $0x10] sm:$0xf]  ;;  %v2022_v56 = vshrl.u32 %v1609_v53, 16  ;;  %v2025_v57 = vshll.u32 %v1609_v53, 16  ;;  %vm993_vm6 = vcmask 1040384  }
  0x6b   : > { %3823 = vmatprep.mubr.msk.bf16.mxu1 %vm1006_vm3, %v4643_v49  ;;  %v1254_v58 = vrot.slane %v1252_v50, 4  ;;  %v1257_v59 = vrot.slane %v1255_v51, 5  ;;  %v4647_v60 = vrot.slane %v1261_v52, 5  ;;  %v4649_v61 = vcombine.low %v1609_v53, %v1610_v55  ;;  %v868_v62 = vld [vmem:[#allocation2 + $0xc] sm:$0xf]  ;;  %vm4880_vm7 = vmand %vm993_vm6, %vm656_vm2  ;;  %s5618_s10 = sld [smem:[#allocation9_spill]] }
  0x6c   : > { %v1267_v63 = vrot.slane %v1265_v54, 4  ;;  %v2031_v0 = vshll.u32 %v1610_v55, 16  ;;  %v869_v1 = vld [vmem:[#allocation2 + $0x10] sm:$0xf]  ;;  %v2024_v3 = vrot.slane %v2022_v56, 4  ;;  %v2035_v4 = vshrl.u32 %v1610_v55, 16 }
  0x6d   : > { %5569 = vst [vmem:[#allocation19_spill] sm:$0xff] %v4649_v61  ;;  %v1258_v2 = vor.u32 %v1257_v59, %v1254_v58  ;;  %3895 = vmatprep.mubr.msk.bf16.mxu0 %vm1006_vm3, %v4649_v61  ;;  %v4653_v5 = vcombine.low %v868_v62, %v869_v1  ;;  %v1003_v6 = vld [vmem:[%s5503_s6] sm:$0x3]  ;;  %v2027_v8 = vrot.slane %v2025_v57, 5  ;;  %vm1248_vm0 = vsmask.f32 3328 }
  0x6e   : > { %v1268_v7 = vor.u32 %v1267_v63, %v4647_v60  ;;  %v4659_v9 = vrot.slane %v2031_v0, 5  ;;  %4114 = vmatprep.subr.msk.bf16.mxu1 %vm1023_vm1, %v1003_v6  ;;  %v1612_v10 = vld [vmem:[#allocation2 + $0x18] sm:$0xf]  ;;  %v2037_v12 = vrot.slane %v2035_v4, 4  ;;  %vm1249_vm4 = vsmask.f32 7440 }
  0x6f   : > { %v4662_v11 = vrot.slane %v1258_v2, 4  ;;  %3824 = vmatmul.mubr.msk.bf16.vlgmr.msra.gmra.mrb[0].mxu1 %vm1006_vm3, %v4653_v5  ;;  %v1613_v13 = vld [vmem:[#allocation2 + $0x1c] sm:$0xf]  ;;  %v1276_v16 = vshrl.u32 %v868_v62, 16  ;;  %v1279_v17 = vshll.u32 %v868_v62, 16  ;;  %v1285_v20 = vshll.u32 %v869_v1, 16  ;;  %vm4692_vm5 = vmor %vm1248_vm0, %vm1249_vm4 }
  0x70   : > { %v3656_v18 = vld [vmem:[%s5503_s6 + $0xa] sm:$0x3]  ;;  %v4671_v19 = vrot.slane %v1268_v7, 4  ;;  %v1289_v21 = vshrl.u32 %v869_v1, 16  ;;  %v4673_v22 = vcombine.low %v1612_v10, %v1613_v13  ;;  %v2046_v27 = vshrl.u32 %v1612_v10, 16  ;;  %s5619_s14 = sld [smem:[#allocation7_spill]] }
  0x71   : > { %4119 = vmatprep.subr.msk.bf16.mxu0 %vm1023_vm1, %v3656_v18  ;;  %v1278_v25 = vrot.slane %v1276_v16, 4  ;;  %v1281_v26 = vrot.slane %v1279_v17, 5  ;;  %v2049_v28 = vshll.u32 %v1612_v10, 16  ;;  %v2028_v29 = vor.u32 %v2027_v8, %v2024_v3  ;;  %v871_v32 = vld [vmem:[#allocation2 + $0x18] sm:$0xf]  ;;  %s3290_s17 = sshll.u32 %s548_s9, 4  ;;  %s5441_s17 = int_to_ptr.vmem [resolvable:$true] %s3290_s17 }
  0x72   : > { %5570 = vst [vmem:[#allocation20_spill] sm:$0xff] %v4673_v22  ;;  %v4676_v30 = vrot.slane %v1285_v20, 5  ;;  %v1291_v31 = vrot.slane %v1289_v21, 4  ;;  %3896 = vmatmul.mubr.msk.bf16.vlgmr.msra.gmra.mrb[0].mxu0 %vm1006_vm3, %v4673_v22  ;;  %v872_v33 = vld [vmem:[#allocation2 + $0x1c] sm:$0xf]  ;;  %v2038_v34 = vor.u32 %v2037_v12, %v4659_v9  ;;  %v2048_v36 = vrot.slane %v2046_v27, 4 }
  0x73   : > { %v1282_v35 = vor.u32 %v1281_v26, %v1278_v25  ;;  %v2051_v37 = vrot.slane %v2049_v28, 5  ;;  %v2055_v39 = vshll.u32 %v1613_v13, 16  ;;  %v2059_v40 = vshrl.u32 %v1613_v13, 16  ;;  %v1615_v24 = vld [vmem:[#allocation2 + $0x24] sm:$0xf]  ;;  %s5621_s28 = sld [smem:[#allocation38_spill]] }
  0x74   : > { %v1292_v38 = vor.u32 %v1291_v31, %v4676_v30  ;;  %v1149_v41 = vsel %vm1023_vm1, %v1003_v6, 0  ;;  %v2264_v44 = vsel %vm1023_vm1, %v3656_v18, 0  ;;  %v4686_v45 = vcombine.low %v871_v32, %v872_v33  ;;  %v1616_v47 = vld [vmem:[#allocation2 + $0x28] sm:$0xf]  ;;  %v874_v0 = vld [vmem:[#allocation2 + $0x24] sm:$0xf] }
  0x75   : > { %v4683_v42 = vrot.slane %v1282_v35, 4  ;;  %v2052_v43 = vor.u32 %v2051_v37, %v2048_v36  ;;  %3840 = vmatpush3.bf16.msra.mxu1 %v1149_v41  ;;  %v4688_v48 = vrot.slane %v2028_v29, 4  ;;  %v4696_v51 = vrot.slane %v2055_v39, 5  ;;  %3912 = vmatpush3.bf16.msra.mxu0 %v2264_v44  ;;  %v875_v1 = vld [vmem:[#allocation2 + $0x28] sm:$0xf]  ;;  %s4219_s18 = scalar_lea.vmem %s5441_s17, 32 }
  0x76   : > { %v2061_v52 = vrot.slane %v2059_v40, 4  ;;  %v1300_v53 = vshrl.u32 %v871_v32, 16  ;;  %3827 = vmatprep.mubr.msk.bf16.mxu1 %vm1006_vm3, %v4686_v45  ;;  %v1303_v56 = vshll.u32 %v871_v32, 16  ;;  %v1309_v57 = vshll.u32 %v872_v33, 16  ;;  %v1618_v4 = vld [vmem:[#allocation2 + $0x30] sm:$0xf]  ;;  %p4220_p7 = scmp.ne.s32.totalorder %s5441_s17, %s4219_s18 }
  0x77   : > { %v4702_v55 = vrot.slane %v2052_v43, 4  ;;  %v4706_v58 = vrot.slane %v2038_v34, 4  ;;  %v1313_v62 = vshrl.u32 %v872_v33, 16  ;;  %v4709_v63 = vcombine.low %v1615_v24, %v1616_v47  ;;  %v1619_v6 = vld [vmem:[#allocation2 + $0x34] sm:$0xf]  ;;  %s4316_s16 = smov [#allocation3]  }
  0x78   : > { %v2062_v59 = vor.u32 %v2061_v52, %v4696_v51  ;;  %v4711_v2 = vrot.slane %v1292_v38, 4  ;;  %v2070_v3 = vshrl.u32 %v1615_v24, 16  ;;  %v4717_v8 = vrot.slane %v1300_v53, 4  ;;  %v877_v13 = vld [vmem:[#allocation2 + $0x30] sm:$0xf]  ;;  %p4221_p9 = pnand %p4220_p7, %p4413_p3  ;;  %s4223_s24 = sshll.u32 %s4316_s16, 4  ;;  %s4224_s24 = int_to_ptr.vmem [resolvable:$false] %s4223_s24 }
  0x79   : > { %5573 = vst [vmem:[#allocation21_spill] sm:$0xff] %v4709_v63  ;;  %3899 = vmatprep.mubr.msk.bf16.mxu0 %vm1006_vm3, %v4709_v63  ;;  %v2073_v10 = vshll.u32 %v1615_v24, 16  ;;  %v2079_v12 = vshll.u32 %v1616_v47, 16  ;;  %v4721_v16 = vrot.slane %v1303_v56, 5  ;;  %v4723_v17 = vrot.slane %v1309_v57, 5  ;;  %s5622_s1 = smov %s5621_s28  ;;  %s4225_s13 = scalar_lea.vmem %s4224_s24, 64 }
  0x7a   : > { %v2083_v18 = vshrl.u32 %v1616_v47, 16  ;;  %v4725_v20 = vcombine.low %v874_v0, %v875_v1  ;;  %v4730_v21 = vld [vmem:[%s5503_s6 + $0xc] sm:$0x3]  ;;  %v4732_v25 = vrot.slane %v2062_v59, 4  ;;  %v4734_v26 = vrot.slane %v1313_v62, 4  ;;  %p4222_p10 = pneg %p4221_p9  ;;  %p4226_p11 = scmp.lt.s32.totalorder %s5441_s17, %s4224_s24 }
  0x7b   : > { %v1324_v27 = vshrl.u32 %v874_v0, 16  ;;  %v1327_v28 = vshll.u32 %v874_v0, 16  ;;  %v878_v29 = vld [vmem:[#allocation2 + $0x34] sm:$0xf]  ;;  %4120 = vmatprep.subr.msk.bf16.mxu0 %vm1023_vm1, %v4730_v21  ;;  %v4738_v31 = vrot.slane %v2070_v3, 4  ;;  %v1333_v32 = vshll.u32 %v875_v1, 16  ;;  %p4227_p12 = scmp.lt.s32.totalorder %s4225_s13, %s4219_s18 }
  0x7c   : > { %3828 = vmatmul.mubr.msk.bf16.gmra.mrb[4].mxu1 %vm1006_vm3, %v4725_v20  ;;  %v1337_v33 = vshrl.u32 %v875_v1, 16  ;;  %v4742_v34 = vcombine.low %v1618_v4, %v1619_v6  ;;  %v1611_v35 = vld [vmem:[#allocation2 + $0x14] sm:$0x1]  ;;  %v4744_v36 = vrot.slane %v2073_v10, 5  ;;  %v4746_v37 = vrot.slane %v2079_v12, 5 }
  0x7d   : > { %v2094_v38 = vshrl.u32 %v1618_v4, 16  ;;  %v2097_v39 = vshll.u32 %v1618_v4, 16  ;;  %v880_v40 = vld [vmem:[#allocation2 + $0x3c] sm:$0xf]  ;;  %v4748_v41 = vrot.slane %v2083_v18, 4  ;;  %v2103_v43 = vshll.u32 %v1619_v6, 16  ;;  %p4228_p13 = por %p4227_p12, %p4226_p11 }
  0x7e   : > { %5574 = vst [vmem:[#allocation22_spill] sm:$0xff] %v4742_v34  ;;  %3900 = vmatmul.mubr.msk.bf16.gmra.mrb[4].mxu0 %vm1006_vm3, %v4742_v34  ;;  %v2107_v44 = vshrl.u32 %v1619_v6, 16  ;;  %v4752_v24 = vcombine.low %v877_v13, %v878_v29  ;;  %v881_v47 = vld [vmem:[#allocation2 + $0x40] sm:$0xf]  ;;  %v4754_v52 = vrot.slane %v1324_v27, 4  ;;  %v4756_v53 = vrot.slane %v1327_v28, 5 }
  0x7f   : > { %v1348_v56 = vshrl.u32 %v877_v13, 16  ;;  %v1351_v57 = vshll.u32 %v877_v13, 16  ;;  %v1614_v59 = vld [vmem:[#allocation2 + $0x20] sm:$0x1]  ;;  %v4758_v62 = vrot.slane %v1333_v32, 5  ;;  %v4760_v0 = vrot.slane %v1337_v33, 4  ;;  %p4229_p0 = pnand %p4228_p13, %p4222_p10 }
  0x80   : > { %3831 = vmatprep.mubr.msk.bf16.mxu1 %vm1006_vm3, %v4752_v24  ;;  %v1357_v1 = vshll.u32 %v878_v29, 16  ;;  %v1361_v3 = vshrl.u32 %v878_v29, 16  ;;  %v883_v4 = vld [vmem:[#allocation2 + $0x48] sm:$0xf]  ;;  %v4764_v6 = vrot.slane %v2094_v38, 4  ;;  %v4766_v10 = vrot.slane %v2097_v39, 5 }
  0x81   : > { %v4768_v12 = vrot.slane %v2103_v43, 5  ;;  %v2041_v18 = vshll.u32 %v1611_v35, 16  ;;  %v884_v27 = vld [vmem:[#allocation2 + $0x4c] sm:$0xf]  ;;  %v4770_v13 = vrot.slane %v2107_v44, 4  ;;  %v4772_v28 = vrot.slane %v1348_v56, 4 }
  0x82   : > { %v4774_v32 = vcombine.low %v880_v40, %v881_v47  ;;  %v1372_v33 = vshrl.u32 %v880_v40, 16  ;;  %v4776_v54 = vrot.slane %v1351_v57, 5  ;;  %v4778_v15 = vrot.slane %v1357_v1, 5  ;;  %v4793_v56 = vld [vmem:[%s5503_s6 + $0x4] sm:$0x3] }
  0x83   : > { %v2034_v29 = vsel %vm4692_vm5, %v4688_v48, %v4659_v9  ;;  %v2043_v38 = vrot.slane %v2041_v18, 5  ;;  %v4784_v39 = vrot.slane %v1361_v3, 4  ;;  %v1375_v35 = vshll.u32 %v880_v40, 16  ;;  %v1617_v3 = vld [vmem:[#allocation2 + $0x2c] sm:$0x1]  ;;  %4115 = vmatprep.subr.msk.bf16.mxu1 %vm1023_vm1, %v4793_v56 }
  0x84   : > { %3832 = vmatmul.mubr.msk.bf16.gmra.mrb[8].mxu1 %vm1006_vm3, %v4774_v32  ;;  %v2065_v43 = vshll.u32 %v1614_v59, 16  ;;  %v4788_v44 = vcombine.low %v883_v4, %v884_v27  ;;  %v4798_v9 = vrot.slane %v1372_v33, 4  ;;  %v1381_v48 = vshll.u32 %v881_v47, 16  ;;  %v4808_v33 = vld [vmem:[#allocation2 + $0x54] sm:$0xf] }
  0x85   : > { %v2044_v57 = vsel %vm4692_vm5, %v4706_v58, %v2043_v38  ;;  %v1385_v1 = vshrl.u32 %v881_v47, 16  ;;  %v1396_v18 = vshrl.u32 %v883_v4, 16  ;;  %v1399_v14 = vshll.u32 %v883_v4, 16  ;;  %v4810_v38 = vld [vmem:[#allocation2 + $0x58] sm:$0xf] }
  0x86   : > { %v3657_v40 = vcombine.low %v2034_v29, %v2044_v57  ;;  %v2067_v59 = vrot.slane %v2065_v43, 5  ;;  %3835 = vmatprep.mubr.msk.bf16.mxu1 %vm1006_vm3, %v4788_v44  ;;  %v1405_v7 = vshll.u32 %v884_v27, 16  ;;  %v1409_v46 = vshrl.u32 %v884_v27, 16 }
  0x87   : > { %v2076_v58 = vor.u32 %v4744_v36, %v4738_v31  ;;  %v2086_v47 = vor.u32 %v4748_v41, %v4746_v37  ;;  %v4813_v29 = vrot.slane %v1375_v35, 5  ;;  %v2543_v27 = vsel %vm1023_vm1, %v4730_v21, 0 }
  0x88   : > { %3913 = vmatprep.mubr.msk.bf16.mxu0 %vm1006_vm3, %v3657_v40  ;;  %v2068_v4 = vsel %vm4692_vm5, %v4732_v25, %v2067_v59  ;;  %v2089_v43 = vshll.u32 %v1617_v3, 16  ;;  %v4820_v31 = vrot.slane %v1381_v48, 5  ;;  %v4822_v36 = vrot.slane %v1385_v1, 4 }
  0x89   : > { %v5575_v41 = vsel %vm4692_vm5, %v4702_v55, %v4696_v51  ;;  %v2077_v35 = vrot.slane %v2076_v58, 4  ;;  %v4829_v40 = vrot.slane %v1396_v18, 4  ;;  %v2087_v34 = vrot.slane %v2086_v47, 4  ;;  %v1620_v55 = vld [vmem:[#allocation2 + $0x38] sm:$0x1] }
  0x8a   : > { %v3658_v57 = vcombine.low %v5575_v41, %v2068_v4  ;;  %v2091_v63 = vrot.slane %v2089_v43, 5  ;;  %v4833_v25 = vcombine.low %v4808_v33, %v4810_v38  ;;  %v4836_v21 = vrot.slane %v1399_v14, 5  ;;  %v4856_v18 = vld [vmem:[#allocation2 + $0x40] sm:$0xf] }
  0x8b   : > { %v4838_v48 = vrot.slane %v1405_v7, 5  ;;  %v4840_v1 = vrot.slane %v1409_v46, 4  ;;  %v2082_v51 = vsel %vm4692_vm5, %v2077_v35, %v4746_v37  ;;  %v2100_v14 = vor.u32 %v4766_v10, %v4764_v6  ;;  %v4854_v7 = vld [vmem:[#allocation2 + $0x3c] sm:$0xf]  ;;  %5578 = vst [vmem:[#allocation25_spill] sm:$0xff] %v4856_v18 }
  0x8c   : > { %3914 = vmatmul.mubr.msk.bf16.vlgmr.msra.gmra.mrb[0].mxu0 %vm1006_vm3, %v3658_v57  ;;  %v2092_v3 = vsel %vm4692_vm5, %v2087_v34, %v2091_v63  ;;  %3836 = vmatmul.mubr.msk.bf16.gmra.mrb[12].mxu1 %vm1006_vm3, %v4833_v25  ;;  %v2110_v46 = vor.u32 %v4770_v13, %v4768_v12  ;;  %5577 = vst [vmem:[#allocation24_spill] sm:$0xff] %v4854_v7  ;;  %v930_v43 = vshrl.u32 %v4643_v49, 16  ;;  %v1623_v6 = vld [vmem:[#allocation2 + $0x44] sm:$0x1]  ;;  %v933_v10 = vshll.u32 %v4643_v49, 16 }
  0x8d   : > { %5576 = vst [vmem:[#allocation23_spill] sm:$0xff] %v4840_v1  ;;  %3930 = vmatpush3.bf16.msra.mxu0 %v2543_v27  ;;  %v3659_v37 = vcombine.low %v2082_v51, %v2092_v3  ;;  %v2101_v47 = vrot.slane %v2100_v14, 4  ;;  %v2113_v27 = vshll.u32 %v1620_v55, 16  ;;  %v2118_v13 = vshrl.u32 %v4854_v7, 16  ;;  %v4867_v35 = vld [vmem:[#allocation2 + $0x48] sm:$0xf] }
  0x8e   : > { %v2111_v4 = vrot.slane %v2110_v46, 4  ;;  %v2121_v41 = vshll.u32 %v4854_v7, 16  ;;  %v2127_v57 = vshll.u32 %v4856_v18, 16  ;;  %v932_v3 = vrot.slane %v930_v43, 7  ;;  %v4876_v49 = vld [vmem:[%s5503_s6 + $0xe] sm:$0x3] }
  0x8f   : > { %3917 = vmatprep.mubr.msk.bf16.mxu0 %vm1006_vm3, %v3659_v37  ;;  %v2106_v51 = vsel %vm4692_vm5, %v2101_v47, %v4768_v12  ;;  %v2115_v55 = vrot.slane %v2113_v27, 5  ;;  %v2131_v14 = vshrl.u32 %v4856_v18, 16  ;;  %v2120_v37 = vrot.slane %v2118_v13, 4  ;;  %4121 = vmatprep.subr.msk.bf16.mxu0 %vm1023_vm1, %v4876_v49  ;;  %v4890_v7 = vld [vmem:[#allocation2 + $0x4c] sm:$0xf] }
  0x90   : > { %v2123_v34 = vrot.slane %v2121_v41, 5  ;;  %v2129_v63 = vrot.slane %v2127_v57, 5  ;;  %v2137_v58 = vshll.u32 %v1623_v6, 16  ;;  %v935_v47 = vor.u32 %v933_v10, %v932_v3  ;;  %v1626_v13 = vld [vmem:[#allocation2 + $0x50] sm:$0x1] }
  0x91   : > { %v2116_v12 = vsel %vm4692_vm5, %v2111_v4, %v2115_v55  ;;  %v2133_v27 = vrot.slane %v2131_v14, 4  ;;  %v5581_v43 = vshrl.u32 %v4653_v5, 16  ;;  %v2142_v41 = vshrl.u32 %v4867_v35, 16  ;;  %v4902_v3 = vld [vmem:[#allocation2 + $0x54] sm:$0xf] }
  0x92   : > { %v3660_v18 = vcombine.low %v2106_v51, %v2116_v12  ;;  %v2124_v22 = vor.u32 %v2123_v34, %v2120_v37  ;;  %v2139_v61 = vrot.slane %v2137_v58, 5  ;;  %v995_v6 = vsel %vm4880_vm7, 0, %v935_v47  ;;  %5583 = vst [vmem:[#allocation26_spill] sm:$0xff] %v4902_v3 }
  0x93   : > { %v939_v59 = vrot.slane %v5581_v43, 7  ;;  %v2134_v57 = vor.u32 %v2133_v27, %v2129_v63  ;;  %v5582_v1 = vshll.u32 %v4653_v5, 16  ;;  %v2145_v10 = vshll.u32 %v4867_v35, 16  ;;  %3841 = vmatprep.mubr.msk.bf16.mxu1 %vm1006_vm3, %v995_v6  ;;  %v4916_v27 = vld [vmem:[#allocation2 + $0x58] sm:$0xf] }
  0x94   : > { %3918 = vmatmul.mubr.msk.bf16.gmra.mrb[4].mxu0 %vm1006_vm3, %v3660_v18  ;;  %v2125_v55 = vrot.slane %v2124_v22, 4  ;;  %v2144_v51 = vrot.slane %v2142_v41, 4  ;;  %v2151_v58 = vshll.u32 %v4890_v7, 16  ;;  %v2155_v34 = vshrl.u32 %v4890_v7, 16  ;;  %5584 = vst [vmem:[#allocation27_spill] sm:$0xff] %v4916_v27 }
  0x95   : > { %v942_v4 = vor.u32 %v5582_v1, %v939_v59  ;;  %v2135_v14 = vrot.slane %v2134_v57, 4  ;;  %v2147_v5 = vrot.slane %v2145_v10, 5  ;;  %v2161_v1 = vshll.u32 %v1626_v13, 16  ;;  %v4909_v59 = vld [vmem:[%s5503_s6 + $0x6] sm:$0x3] }
  0x96   : > { %v2130_v22 = vsel %vm4692_vm5, %v2125_v55, %v2129_v63  ;;  %v2153_v18 = vrot.slane %v2151_v58, 5  ;;  %v2157_v12 = vrot.slane %v2155_v34, 4  ;;  %v1494_v47 = vsel %vm1023_vm1, %v4793_v56, 0  ;;  %v1629_v57 = vld [vmem:[#allocation2 + $0x5c] sm:$0x1] }
  0x97   : > { %v996_v37 = vsel %vm4880_vm7, 0, %v942_v4  ;;  %v2140_v43 = vsel %vm4692_vm5, %v2135_v14, %v2139_v61  ;;  %v2148_v13 = vor.u32 %v2147_v5, %v2144_v51  ;;  %v2163_v41 = vrot.slane %v2161_v1, 5 }
  0x98   : > { %3842 = vmatmul.mubr.msk.bf16.vlgmr.msra.gmra.mrb[0].mxu1 %vm1006_vm3, %v996_v37  ;;  %v944_v6 = vshrl.u32 %v4686_v45, 16  ;;  %v3661_v4 = vcombine.low %v2130_v22, %v2140_v43  ;;  %v2158_v63 = vor.u32 %v2157_v12, %v2153_v18  ;;  %v947_v10 = vshll.u32 %v4686_v45, 16  ;;  %v4933_v43 = vld [vmem:[#allocation2 + $0x64] sm:$0xf] }
  0x99   : > { %3858 = vmatpush3.bf16.msra.mxu1 %v1494_v47  ;;  %v2166_v55 = vshrl.u32 %v4902_v3, 16  ;;  %v2149_v56 = vrot.slane %v2148_v13, 4  ;;  %v2169_v34 = vshll.u32 %v4902_v3, 16  ;;  %v2175_v61 = vshll.u32 %v4916_v27, 16  ;;  %v4931_v47 = vld [vmem:[#allocation2 + $0x60] sm:$0xf] }
  0x9a   : > { %4116 = vmatprep.subr.msk.bf16.mxu1 %vm1023_vm1, %v4909_v59  ;;  %v946_v58 = vrot.slane %v944_v6, 7  ;;  %3921 = vmatprep.mubr.msk.bf16.mxu0 %vm1006_vm3, %v3661_v4  ;;  %v2159_v51 = vrot.slane %v2158_v63, 4  ;;  %v2179_v37 = vshrl.u32 %v4916_v27, 16  ;;  %v2185_v5 = vshll.u32 %v1629_v57, 16  ;;  %5585 = vst [vmem:[#allocation28_spill] sm:$0xff] %v4931_v47  ;;  %5586 = vst [vmem:[#allocation29_spill] sm:$0xff] %v4933_v43 }
  0x9b   : > { %v2168_v14 = vrot.slane %v2166_v55, 4  ;;  %v2154_v45 = vsel %vm4692_vm5, %v2149_v56, %v2153_v18  ;;  %v2171_v22 = vrot.slane %v2169_v34, 5  ;;  %v2177_v12 = vrot.slane %v2175_v61, 5  ;;  %v1632_v55 = vld [vmem:[#allocation2 + $0x68] sm:$0x1] }
  0x9c   : > { %v949_v1 = vor.u32 %v947_v10, %v946_v58  ;;  %v2164_v13 = vsel %vm4692_vm5, %v2159_v51, %v2163_v41  ;;  %v2181_v6 = vrot.slane %v2179_v37, 4  ;;  %v2187_v4 = vrot.slane %v2185_v5, 5 }
  0x9d   : > { %v951_v63 = vshrl.u32 %v4725_v20, 16  ;;  %v3662_v3 = vcombine.low %v2154_v45, %v2164_v13  ;;  %v2172_v18 = vor.u32 %v2171_v22, %v2168_v14  ;;  %v954_v10 = vshll.u32 %v4725_v20, 16  ;;  %v4947_v45 = vld [vmem:[#allocation2 + $0x18] sm:$0xf]  ;;  %v4949_v13 = vld [vmem:[#allocation2 + $0x1c] sm:$0xf] }
  0x9e   : > { %v997_v57 = vsel %vm4880_vm7, 0, %v949_v1  ;;  %v2182_v56 = vor.u32 %v2181_v6, %v2177_v12  ;;  %v2190_v34 = vshrl.u32 %v4931_v47, 16  ;;  %v2193_v41 = vshll.u32 %v4931_v47, 16  ;;  %5587 = vst [vmem:[#allocation30_spill] sm:$0xff] %v4949_v13 }
  0x9f   : > { %3845 = vmatprep.mubr.msk.bf16.mxu1 %vm1006_vm3, %v997_v57  ;;  %v953_v58 = vrot.slane %v951_v63, 7  ;;  %3922 = vmatmul.mubr.msk.bf16.gmra.mrb[8].mxu0 %vm1006_vm3, %v3662_v3  ;;  %v2173_v61 = vrot.slane %v2172_v18, 4  ;;  %v2199_v51 = vshll.u32 %v4933_v43, 16  ;;  %v2203_v37 = vshrl.u32 %v4933_v43, 16 }
  0xa0   : > { %v2209_v5 = vshll.u32 %v1632_v55, 16  ;;  %v2183_v14 = vrot.slane %v2182_v56, 4  ;;  %v2192_v1 = vrot.slane %v2190_v34, 4  ;;  %v2195_v22 = vrot.slane %v2193_v41, 5 }
  0xa1   : > { %v956_v20 = vor.u32 %v954_v10, %v953_v58  ;;  %v2178_v6 = vsel %vm4692_vm5, %v2173_v61, %v2177_v12  ;;  %v2201_v63 = vrot.slane %v2199_v51, 5  ;;  %v2205_v57 = vrot.slane %v2203_v37, 4  ;;  %v4958_v10 = vld [vmem:[#allocation2 + $0x24] sm:$0xf]  ;;  %v4960_v58 = vld [vmem:[#allocation2 + $0x28] sm:$0xf] }
  0xa2   : > { %v2211_v3 = vrot.slane %v2209_v5, 5  ;;  %v2188_v18 = vsel %vm4692_vm5, %v2183_v14, %v2187_v4  ;;  %v2196_v47 = vor.u32 %v2195_v22, %v2192_v1  ;;  %v958_v56 = vshrl.u32 %v4752_v24, 16 }
  0xa3   : > { %v998_v55 = vsel %vm4880_vm7, 0, %v956_v20  ;;  %v3663_v34 = vcombine.low %v2178_v6, %v2188_v18  ;;  %v2206_v12 = vor.u32 %v2205_v57, %v2201_v63  ;;  %v961_v41 = vshll.u32 %v4752_v24, 16 }
  0xa4   : > { %3846 = vmatmul.mubr.msk.bf16.gmra.mrb[4].mxu1 %vm1006_vm3, %v998_v55  ;;  %v4966_v61 = vcombine.low %v4947_v45, %v4949_v13  ;;  %v2197_v4 = vrot.slane %v2196_v47, 4  ;;  %v960_v51 = vrot.slane %v958_v56, 7  ;;  %v965_v37 = vshrl.u32 %v4774_v32, 16 }
  0xa5   : > { %v968_v5 = vshll.u32 %v4774_v32, 16  ;;  %3925 = vmatprep.mubr.msk.bf16.mxu0 %vm1006_vm3, %v3663_v34  ;;  %v2207_v14 = vrot.slane %v2206_v12, 4  ;;  %v4975_v24 = vcombine.low %v4958_v10, %v4960_v58  ;;  %v5588_v22 = vshrl.u32 %v4808_v33, 16 }
  0xa6   : > { %v2445_v20 = vshrl.u32 %v4966_v61, 16  ;;  %v2448_v1 = vshll.u32 %v4966_v61, 16  ;;  %v2202_v47 = vsel %vm4692_vm5, %v2197_v4, %v2201_v63  ;;  %v963_v57 = vor.u32 %v961_v41, %v960_v51  ;;  %v4998_v51 = vld [vmem:[#allocation2 + $0x30] sm:$0xf] }
  0xa7   : > { %v4979_v6 = vrot.slane %v5588_v22, 4  ;;  %v967_v32 = vrot.slane %v965_v37, 7  ;;  %v2212_v18 = vsel %vm4692_vm5, %v2207_v14, %v2211_v3  ;;  %v2452_v56 = vshrl.u32 %v4975_v24, 16  ;;  %5591 = vst [vmem:[#allocation31_spill] sm:$0xff] %v4998_v51  ;;  %v5000_v37 = vld [vmem:[#allocation2 + $0x34] sm:$0xf] }
  0xa8   : > { %v2447_v55 = vrot.slane %v2445_v20, 7  ;;  %v2455_v34 = vshll.u32 %v4975_v24, 16  ;;  %v5589_v12 = vshll.u32 %v4808_v33, 16  ;;  %v3664_v27 = vcombine.low %v2202_v47, %v2212_v18  ;;  %5592 = vst [vmem:[#allocation32_spill] sm:$0xff] %v5000_v37  ;;  %v5008_v20 = vld [vmem:[#allocation2 + $0x40] sm:$0xf] }
  0xa9   : > { %v999_v22 = vsel %vm4880_vm7, 0, %v963_v57  ;;  %v970_v13 = vor.u32 %v968_v5, %v967_v32  ;;  %v5590_v63 = vshll.u32 %v4810_v38, 16  ;;  %v2454_v4 = vrot.slane %v2452_v56, 7  ;;  %v5006_v5 = vld [vmem:[#allocation2 + $0x3c] sm:$0xf]  ;;  %5594 = vst [vmem:[#allocation34_spill] sm:$0xff] %v5008_v20 }
  0xaa   : > { %v4989_v43 = vrot.slane %v5589_v12, 5  ;;  %3849 = vmatprep.mubr.msk.bf16.mxu1 %vm1006_vm3, %v999_v22  ;;  %v2450_v3 = vor.u32 %v2448_v1, %v2447_v55  ;;  %3926 = vmatmul.mubr.msk.bf16.gmra.mrb[12].mxu0 %vm1006_vm3, %v3664_v27  ;;  %v972_v14 = vshrl.u32 %v4788_v44, 16  ;;  %5593 = vst [vmem:[#allocation33_spill] sm:$0xff] %v5006_v5  ;;  %v5595_v47 = vshrl.u32 %v4810_v38, 16  ;;  %v867_v27 = vld [vmem:[#allocation2 + $0x8] sm:$0x1] }
  0xab   : > { %v4995_v41 = vrot.slane %v5590_v63, 5  ;;  %v1000_v33 = vsel %vm4880_vm7, 0, %v970_v13  ;;  %v2457_v32 = vor.u32 %v2455_v34, %v2454_v4  ;;  %v5017_v18 = vld [vmem:[#allocation2 + $0x48] sm:$0xf]  ;;  %v2677_v13 = vsel %vm1023_vm1, %v4876_v49, 0 }
  0xac   : > { %v5012_v57 = vrot.slane %v5595_v47, 4  ;;  %v2508_v1 = vsel %vm4880_vm7, 0, %v2450_v3  ;;  %3850 = vmatmul.mubr.msk.bf16.gmra.mrb[8].mxu1 %vm1006_vm3, %v1000_v33  ;;  %v974_v55 = vrot.slane %v972_v14, 7  ;;  %v975_v56 = vshll.u32 %v4788_v44, 16  ;;  %v5027_v12 = vld [vmem:[#allocation2 + $0x4c] sm:$0xf] }
  0xad   : > { %3931 = vmatprep.mubr.msk.bf16.mxu0 %vm1006_vm3, %v2508_v1  ;;  %v5025_v38 = vcombine.low %v4998_v51, %v5000_v37  ;;  %v2509_v34 = vsel %vm4880_vm7, 0, %v2457_v32  ;;  %v979_v22 = vshrl.u32 %v4833_v25, 16  ;;  %v982_v63 = vshll.u32 %v4833_v25, 16  ;;  %v870_v49 = vld [vmem:[#allocation2 + $0x14] sm:$0x1] }
  0xae   : > { %v5035_v3 = vcombine.low %v5006_v5, %v5008_v20  ;;  %v977_v4 = vor.u32 %v975_v56, %v974_v55  ;;  %v1264_v14 = vsel %vm4692_vm5, %v4662_v11, %v4647_v60  ;;  %v5043_v47 = vld [vmem:[#allocation2 + $0x54] sm:$0xf]  ;;  %v5045_v1 = vld [vmem:[#allocation2 + $0x58] sm:$0xf]  ;;  %v1271_v5 = vshll.u32 %v867_v27, 16 }
  0xaf   : > { %5596 = vst [vmem:[#allocation35_spill] sm:$0xff] %v5025_v38  ;;  %v2459_v44 = vshrl.u32 %v5025_v38, 16  ;;  %v2462_v33 = vshll.u32 %v5025_v38, 16  ;;  %5597 = vst [vmem:[#allocation36_spill] sm:$0xff] %v5045_v1  ;;  %v981_v25 = vrot.slane %v979_v22, 7  ;;  %v5053_v37 = vcombine.low %v5017_v18, %v5027_v12 }
  0xb0   : > { %v2466_v32 = vshrl.u32 %v5035_v3, 16  ;;  %v2469_v20 = vshll.u32 %v5035_v3, 16  ;;  %v1001_v55 = vsel %vm4880_vm7, 0, %v977_v4  ;;  %v1295_v51 = vshll.u32 %v870_v49, 16  ;;  %v5063_v27 = vld [vmem:[%s5503_s6 + $0x10] sm:$0x3] }
  0xb1   : > { %v2461_v56 = vrot.slane %v2459_v44, 7  ;;  %3853 = vmatprep.mubr.msk.bf16.mxu1 %vm1006_vm3, %v1001_v55  ;;  %v984_v60 = vor.u32 %v982_v63, %v981_v25  ;;  %v1273_v38 = vrot.slane %v1271_v5, 5  ;;  %v5058_v22 = vcombine.low %v5043_v47, %v5045_v1  ;;  %v873_v1 = vld [vmem:[#allocation2 + $0x20] sm:$0x1] }
  0xb2   : > { %v2468_v11 = vrot.slane %v2466_v32, 7  ;;  %3932 = vmatmul.mubr.msk.bf16.vlgmr.msra.gmra.mrb[0].mxu0 %vm1006_vm3, %v2509_v34  ;;  %v2473_v44 = vshrl.u32 %v5053_v37, 16  ;;  %v2476_v49 = vshll.u32 %v5053_v37, 16  ;;  %v1297_v55 = vrot.slane %v1295_v51, 5 }
  0xb3   : > { %v2464_v4 = vor.u32 %v2462_v33, %v2461_v56  ;;  %3948 = vmatpush3.bf16.msra.mxu0 %v2677_v13  ;;  %v1002_v5 = vsel %vm4880_vm7, 0, %v984_v60  ;;  %v1274_v25 = vsel %vm4692_vm5, %v4671_v19, %v1273_v38  ;;  %v2480_v32 = vshrl.u32 %v5058_v22, 16  ;;  %v5080_v13 = vld [vmem:[#allocation2 + $0x60] sm:$0xf] }
  0xb4   : > { %v2471_v63 = vor.u32 %v2469_v20, %v2468_v11  ;;  %3854 = vmatmul.mubr.msk.bf16.gmra.mrb[12].mxu1 %vm1006_vm3, %v1002_v5  ;;  %v3614_v33 = vcombine.low %v1264_v14, %v1274_v25  ;;  %v2475_v56 = vrot.slane %v2473_v44, 7  ;;  %v1298_v51 = vsel %vm4692_vm5, %v4711_v2, %v1297_v55  ;;  %v5082_v20 = vld [vmem:[#allocation2 + $0x64] sm:$0xf]  ;;  %4122 = vmatprep.subr.msk.bf16.mxu0 %vm1023_vm1, %v5063_v27 }
  0xb5   : > { %v2510_v34 = vsel %vm4880_vm7, 0, %v2464_v4  ;;  %v5598_v38 = vsel %vm4692_vm5, %v4683_v42, %v4676_v30  ;;  %v2482_v60 = vrot.slane %v2480_v32, 7  ;;  %v2483_v2 = vshll.u32 %v5058_v22, 16  ;;  %v876_v42 = vld [vmem:[#allocation2 + $0x2c] sm:$0x1] }
  0xb6   : > { %3935 = vmatprep.mubr.msk.bf16.mxu0 %vm1006_vm3, %v2510_v34  ;;  %v2511_v19 = vsel %vm4880_vm7, 0, %v2471_v63  ;;  %v3615_v14 = vcombine.low %v5598_v38, %v1298_v51  ;;  %3859 = vmatprep.mubr.msk.bf16.mxu1 %vm1006_vm3, %v3614_v33  ;;  %v2478_v11 = vor.u32 %v2476_v49, %v2475_v56  ;;  %v1772_v4 = vsel %vm1023_vm1, %v4909_v59, 0  ;;  %v5108_v49 = vld [vmem:[#allocation2 + $0x6c] sm:$0xf] }
  0xb7   : > { %v1306_v44 = vor.u32 %v4721_v16, %v4717_v8  ;;  %v1316_v55 = vor.u32 %v4734_v26, %v4723_v17  ;;  %v2485_v5 = vor.u32 %v2483_v2, %v2482_v60  ;;  %v1319_v63 = vshll.u32 %v873_v1, 16  ;;  %v5114_v26 = vld [vmem:[#allocation2 + $0x70] sm:$0xf] }
  0xb8   : > { %v5104_v30 = vcombine.low %v5080_v13, %v5082_v20  ;;  %v1330_v25 = vor.u32 %v4756_v53, %v4754_v52  ;;  %v2512_v59 = vsel %vm4880_vm7, 0, %v2478_v11  ;;  %v1340_v16 = vor.u32 %v4760_v0, %v4758_v62  ;;  %v879_v11 = vld [vmem:[#allocation2 + $0x38] sm:$0x1] }
  0xb9   : > { %v1307_v32 = vrot.slane %v1306_v44, 4  ;;  %v1317_v8 = vrot.slane %v1316_v55, 4  ;;  %v2513_v1 = vsel %vm4880_vm7, 0, %v2485_v5  ;;  %v1321_v34 = vrot.slane %v1319_v63, 5 }
  0xba   : > { %v2487_v33 = vshrl.u32 %v5104_v30, 16  ;;  %v2490_v52 = vshll.u32 %v5104_v30, 16  ;;  %3936 = vmatmul.mubr.msk.bf16.gmra.mrb[4].mxu0 %vm1006_vm3, %v2511_v19  ;;  %v1331_v56 = vrot.slane %v1330_v25, 4  ;;  %v1341_v51 = vrot.slane %v1340_v16, 4 }
  0xbb   : > { %v1312_v53 = vsel %vm4692_vm5, %v1307_v32, %v4723_v17  ;;  %v1343_v38 = vshll.u32 %v876_v42, 16  ;;  %3939 = vmatprep.mubr.msk.bf16.mxu0 %vm1006_vm3, %v2512_v59  ;;  %v1322_v0 = vsel %vm4692_vm5, %v1317_v8, %v1321_v34  ;;  %v5129_v2 = vcombine.low %v5108_v49, %v5114_v26  ;;  %v882_v32 = vld [vmem:[#allocation2 + $0x44] sm:$0x1] }
  0xbc   : > { %v2489_v60 = vrot.slane %v2487_v33, 7  ;;  %v1354_v19 = vor.u32 %v4776_v54, %v4772_v28  ;;  %3860 = vmatmul.mubr.msk.bf16.vlgmr.msra.gmra.mrb[0].mxu1 %vm1006_vm3, %v3615_v14  ;;  %v3616_v17 = vcombine.low %v1312_v53, %v1322_v0  ;;  %v1336_v44 = vsel %vm4692_vm5, %v1331_v56, %v4758_v62  ;;  %v885_v56 = vld [vmem:[#allocation2 + $0x50] sm:$0x1] }
  0xbd   : > { %v1345_v55 = vrot.slane %v1343_v38, 5  ;;  %v1364_v5 = vor.u32 %v4784_v39, %v4778_v15  ;;  %3876 = vmatpush3.bf16.msra.mxu1 %v1772_v4  ;;  %v2494_v42 = vshrl.u32 %v5129_v2, 16  ;;  %v2497_v25 = vshll.u32 %v5129_v2, 16 }
  0xbe   : > { %v2492_v63 = vor.u32 %v2490_v52, %v2489_v60  ;;  %v1355_v59 = vrot.slane %v1354_v19, 4  ;;  %3863 = vmatprep.mubr.msk.bf16.mxu1 %vm1006_vm3, %v3616_v17  ;;  %v1367_v14 = vshll.u32 %v879_v11, 16  ;;  %v1378_v62 = vor.u32 %v4813_v29, %v4798_v9  ;;  %4118 = vmatprep.subr.msk.bf16.mxu1 %vm1023_vm1, %v4632_v23  ;;  %v5599_v23 = vld [vmem:[#allocation23_spill] sm:$0xff] }
  0xbf   : > { %v1346_v54 = vsel %vm4692_vm5, %v1341_v51, %v1345_v55  ;;  %v1365_v28 = vrot.slane %v1364_v5, 4  ;;  %v2496_v8 = vrot.slane %v2494_v42, 7  ;;  %v1388_v52 = vor.u32 %v4822_v36, %v4820_v31  ;;  %v888_v36 = vld [vmem:[#allocation2 + $0x5c] sm:$0x1] }
  0xc0   : > { %v2514_v39 = vsel %vm4880_vm7, 0, %v2492_v63  ;;  %v3617_v4 = vcombine.low %v1336_v44, %v1346_v54  ;;  %v1360_v16 = vsel %vm4692_vm5, %v1355_v59, %v4778_v15  ;;  %v1369_v34 = vrot.slane %v1367_v14, 5  ;;  %v5600_v59 = vld [vmem:[#allocation19_spill] sm:$0xff] }
  0xc1   : > { %v1379_v33 = vrot.slane %v1378_v62, 4  ;;  %v1391_v53 = vshll.u32 %v882_v32, 16  ;;  %v1402_v9 = vor.u32 %v4836_v21, %v4829_v40  ;;  %v1412_v29 = vor.u32 %v5599_v23, %v4838_v48 }
  0xc2   : > { %3940 = vmatmul.mubr.msk.bf16.gmra.mrb[8].mxu0 %vm1006_vm3, %v2513_v1  ;;  %v1370_v51 = vsel %vm4692_vm5, %v1365_v28, %v1369_v34  ;;  %v1389_v38 = vrot.slane %v1388_v52, 4  ;;  %v2499_v60 = vor.u32 %v2497_v25, %v2496_v8  ;;  %v1415_v19 = vshll.u32 %v885_v56, 16  ;;  %v5603_v34 = vld [vmem:[#allocation24_spill] sm:$0xff] }
  0xc3   : > { %v1384_v15 = vsel %vm4692_vm5, %v1379_v33, %v4820_v31  ;;  %v1393_v0 = vrot.slane %v1391_v53, 5  ;;  %3943 = vmatprep.mubr.msk.bf16.mxu0 %vm1006_vm3, %v2514_v39  ;;  %v3618_v11 = vcombine.low %v1360_v16, %v1370_v51  ;;  %v1403_v40 = vrot.slane %v1402_v9, 4  ;;  %v5602_v16 = vld [vmem:[#allocation25_spill] sm:$0xff] }
  0xc4   : > { %v1413_v21 = vrot.slane %v1412_v29, 4  ;;  %3864 = vmatmul.mubr.msk.bf16.gmra.mrb[4].mxu1 %vm1006_vm3, %v3617_v4  ;;  %v1426_v17 = vor.u32 %v4989_v43, %v4979_v6  ;;  %v1436_v31 = vor.u32 %v5012_v57, %v4995_v41  ;;  %v1439_v5 = vshll.u32 %v888_v36, 16  ;;  %v5601_v4 = vld [vmem:[#allocation20_spill] sm:$0xff]  ;;  %v5604_v53 = vld [vmem:[#allocation21_spill] sm:$0xff] }
  0xc5   : > { %v1394_v1 = vsel %vm4692_vm5, %v1389_v38, %v1393_v0  ;;  %3867 = vmatprep.mubr.msk.bf16.mxu1 %vm1006_vm3, %v3618_v11  ;;  %v1408_v55 = vsel %vm4692_vm5, %v1403_v40, %v4838_v48  ;;  %v1417_v63 = vrot.slane %v1415_v19, 5  ;;  %v1674_v32 = vshrl.u32 %v5600_v59, 16 }
  0xc6   : > { %v3619_v44 = vcombine.low %v1384_v15, %v1394_v1  ;;  %v1427_v42 = vrot.slane %v1426_v17, 4  ;;  %v1437_v25 = vrot.slane %v1436_v31, 4  ;;  %v2515_v54 = vsel %vm4880_vm7, 0, %v2499_v60  ;;  %v5605_v60 = vld [vmem:[#allocation22_spill] sm:$0xff] }
  0xc7   : > { %v1441_v43 = vrot.slane %v1439_v5, 5  ;;  %v1418_v6 = vsel %vm4692_vm5, %v1413_v21, %v1417_v63  ;;  %v1676_v62 = vrot.slane %v1674_v32, 7  ;;  %v1677_v39 = vshll.u32 %v5600_v59, 16  ;;  %v5608_v59 = vld [vmem:[#allocation27_spill] sm:$0xff]  ;;  %v5609_v32 = vld [vmem:[#allocation26_spill] sm:$0xff] }
  0xc8   : > { %v1432_v57 = vsel %vm4692_vm5, %v1427_v42, %v4995_v41  ;;  %v3620_v28 = vcombine.low %v1408_v55, %v1418_v6  ;;  %v1681_v8 = vshrl.u32 %v5601_v4, 16  ;;  %v5194_v33 = vcombine.low %v5603_v34, %v5602_v16  ;;  %v5607_v55 = vld [vmem:[#allocation35_spill] sm:$0xff]  ;;  %v2382_v42 = vld [vmem:[#allocation2 + $0x20] sm:$0x1] }
  0xc9   : > { %v1442_v48 = vsel %vm4692_vm5, %v1437_v25, %v1441_v43  ;;  %v1684_v41 = vshll.u32 %v5601_v4, 16  ;;  %v2817_v52 = vshrl.u32 %v4958_v10, 16  ;;  %v1688_v56 = vshrl.u32 %v5604_v53, 16  ;;  %v2385_v4 = vld [vmem:[#allocation2 + $0x2c] sm:$0x1]  ;;  %v5610_v16 = vld [vmem:[#allocation31_spill] sm:$0xff] }
  0xca   : > { %3944 = vmatmul.mubr.msk.bf16.gmra.mrb[12].mxu0 %vm1006_vm3, %v2515_v54  ;;  %v3621_v14 = vcombine.low %v1432_v57, %v1442_v48  ;;  %v2820_v9 = vshll.u32 %v4958_v10, 16  ;;  %v1679_v23 = vor.u32 %v1677_v39, %v1676_v62  ;;  %v2793_v29 = vshrl.u32 %v4947_v45, 16  ;;  %v5606_v10 = vld [vmem:[#allocation30_spill] sm:$0xff] }
  0xcb   : > { %3949 = vmatprep.mubr.msk.bf16.mxu0 %vm1006_vm3, %v4966_v61  ;;  %v2796_v61 = vshll.u32 %v4947_v45, 16  ;;  %v2826_v51 = vshll.u32 %v4960_v58, 16  ;;  %v2830_v15 = vshrl.u32 %v4960_v58, 16  ;;  %v1683_v38 = vrot.slane %v1681_v8, 7 }
  0xcc   : > { %3868 = vmatmul.mubr.msk.bf16.gmra.mrb[8].mxu1 %vm1006_vm3, %v3619_v44  ;;  %v5208_v0 = vcombine.low %v4867_v35, %v4890_v7  ;;  %v3035_v36 = vsel %vm1023_vm1, %v5063_v27, 0  ;;  %v1695_v11 = vshrl.u32 %v5605_v60, 16  ;;  %v2802_v40 = vshll.u32 %v5606_v10, 16 }
  0xcd   : > { %3871 = vmatprep.mubr.msk.bf16.mxu1 %vm1006_vm3, %v3620_v28  ;;  %v2806_v21 = vshrl.u32 %v5606_v10, 16  ;;  %v2819_v1 = vrot.slane %v2817_v52, 4  ;;  %v1690_v45 = vrot.slane %v1688_v56, 7  ;;  %v1691_v19 = vshll.u32 %v5604_v53, 16  ;;  %v5611_v52 = vld [vmem:[#allocation29_spill] sm:$0xff]  ;;  %v5612_v53 = vld [vmem:[#allocation28_spill] sm:$0xff] }
  0xce   : > { %v1702_v58 = vshrl.u32 %v5194_v33, 16  ;;  %v2822_v17 = vrot.slane %v2820_v9, 5  ;;  %v1737_v7 = vsel %vm4880_vm7, 0, %v1679_v23  ;;  %v2795_v35 = vrot.slane %v2793_v29, 4 }
  0xcf   : > { %v2798_v27 = vrot.slane %v2796_v61, 5  ;;  %v5221_v31 = vrot.slane %v2826_v51, 5  ;;  %v2832_v44 = vrot.slane %v2830_v15, 4  ;;  %v1686_v5 = vor.u32 %v1684_v41, %v1683_v38 }
  0xd0   : > { %v1697_v63 = vrot.slane %v1695_v11, 7  ;;  %v5226_v25 = vrot.slane %v2802_v40, 5  ;;  %v5230_v54 = vcombine.low %v5609_v32, %v5608_v59  ;;  %v1693_v43 = vor.u32 %v1691_v19, %v1690_v45  ;;  %v5613_v11 = vld [vmem:[#allocation32_spill] sm:$0xff]  ;;  %v5614_v19 = vld [vmem:[#allocation18_spill] sm:$0xff] }
  0xd1   : > { %v1698_v6 = vshll.u32 %v5605_v60, 16  ;;  %v1704_v57 = vrot.slane %v1702_v58, 7  ;;  %v1705_v28 = vshll.u32 %v5194_v33, 16  ;;  %v2799_v48 = vor.u32 %v2798_v27, %v2795_v35 }
  0xd2   : > { %3950 = vmatmul.mubr.msk.bf16.vlgmr.msra.gmra.mrb[0].mxu0 %vm1006_vm3, %v4975_v24  ;;  %v2808_v24 = vrot.slane %v2806_v21, 4  ;;  %v2823_v62 = vor.u32 %v2822_v17, %v2819_v1  ;;  %v2812_v39 = vshll.u32 %v2382_v42, 16  ;;  %v2841_v34 = vshrl.u32 %v5610_v16, 16 }
  0xd3   : > { %3966 = vmatpush3.bf16.msra.mxu0 %v3035_v36  ;;  %3953 = vmatprep.mubr.msk.bf16.mxu0 %vm1006_vm3, %v5607_v55  ;;  %v2844_v41 = vshll.u32 %v5610_v16, 16  ;;  %v5242_v56 = vcombine.low %v5612_v53, %v5611_v52  ;;  %v1739_v9 = vsel %vm4880_vm7, 0, %v1693_v43  ;;  %v1700_v23 = vor.u32 %v1698_v6, %v1697_v63 }
  0xd4   : > { %3872 = vmatmul.mubr.msk.bf16.gmra.mrb[12].mxu1 %vm1006_vm3, %v3621_v14  ;;  %v1738_v14 = vsel %vm4880_vm7, 0, %v1686_v5  ;;  %v2809_v8 = vor.u32 %v2808_v24, %v5226_v25  ;;  %v1707_v29 = vor.u32 %v1705_v28, %v1704_v57  ;;  %v2833_v61 = vor.u32 %v2832_v44, %v5221_v31  ;;  %v2388_v5 = vld [vmem:[#allocation2 + $0x38] sm:$0x1]  ;;  %v5616_v28 = vld [vmem:[#allocation34_spill] sm:$0xff] }
  0xd5   : > { %3877 = vmatprep.mubr.msk.bf16.mxu1 %vm1006_vm3, %v1737_v7  ;;  %v2800_v51 = vrot.slane %v2799_v48, 4  ;;  %v1709_v15 = vshrl.u32 %v5208_v0, 16  ;;  %v5250_v38 = vrot.slane %v2823_v62, 4  ;;  %v2836_v36 = vshll.u32 %v2385_v4, 16  ;;  %v5615_v24 = vld [vmem:[#allocation33_spill] sm:$0xff] }
  0xd6   : > { %v2814_v60 = vrot.slane %v2812_v39, 5  ;;  %v2850_v10 = vshll.u32 %v5613_v11, 16  ;;  %v2854_v40 = vshrl.u32 %v5613_v11, 16  ;;  %v2810_v21 = vrot.slane %v2809_v8, 4 }
  0xd7   : > { %v1716_v1 = vshrl.u32 %v5230_v54, 16  ;;  %v2846_v45 = vrot.slane %v2844_v41, 5  ;;  %v1740_v58 = vsel %vm4880_vm7, 0, %v1700_v23  ;;  %v1712_v17 = vshll.u32 %v5208_v0, 16 }
  0xd8   : > { %v2834_v7 = vrot.slane %v2833_v61, 4  ;;  %v2805_v35 = vsel %vm4692_vm5, %v2800_v51, %v5226_v25  ;;  %v1711_v27 = vrot.slane %v1709_v15, 7  ;;  %v2829_v44 = vsel %vm4692_vm5, %v5250_v38, %v5221_v31 }
  0xd9   : > { %v2838_v55 = vrot.slane %v2836_v36, 5  ;;  %v5272_v63 = vrot.slane %v2850_v10, 5  ;;  %v2856_v42 = vrot.slane %v2854_v40, 4  ;;  %v2865_v59 = vshrl.u32 %v5615_v24, 16  ;;  %v2394_v36 = vld [vmem:[#allocation2 + $0x50] sm:$0x1] }
  0xda   : > { %3954 = vmatmul.mubr.msk.bf16.gmra.mrb[4].mxu0 %vm1006_vm3, %v5035_v3  ;;  %v2843_v3 = vrot.slane %v2841_v34, 4  ;;  %v2868_v32 = vshll.u32 %v5615_v24, 16  ;;  %v2815_v43 = vsel %vm4692_vm5, %v2810_v21, %v2814_v60  ;;  %v1718_v6 = vrot.slane %v1716_v1, 7 }
  0xdb   : > { %3957 = vmatprep.mubr.msk.bf16.mxu0 %vm1006_vm3, %v5053_v37  ;;  %v1741_v37 = vsel %vm4880_vm7, 0, %v1707_v29  ;;  %v1719_v25 = vshll.u32 %v5230_v54, 16  ;;  %v2874_v48 = vshll.u32 %v5616_v28, 16  ;;  %v2878_v31 = vshrl.u32 %v5616_v28, 16  ;;  %v2391_v29 = vld [vmem:[#allocation2 + $0x44] sm:$0x1] }
  0xdc   : > { %3878 = vmatmul.mubr.msk.bf16.vlgmr.msra.gmra.mrb[0].mxu1 %vm1006_vm3, %v1738_v14  ;;  %v2847_v57 = vor.u32 %v2846_v45, %v2843_v3  ;;  %v2889_v62 = vshrl.u32 %v5017_v18, 16  ;;  %v2892_v14 = vshll.u32 %v5017_v18, 16  ;;  %v1714_v39 = vor.u32 %v1712_v17, %v1711_v27 }
  0xdd   : > { %3984 = vmatpush3.bf16.msra.mxu1 %v5614_v19  ;;  %3881 = vmatprep.mubr.msk.bf16.mxu1 %vm1006_vm3, %v1739_v9  ;;  %v2860_v4 = vshll.u32 %v2388_v5, 16  ;;  %v2898_v8 = vshll.u32 %v5027_v12, 16  ;;  %v2902_v16 = vshrl.u32 %v5027_v12, 16  ;;  %v2857_v34 = vor.u32 %v2856_v42, %v5272_v63 }
  0xde   : > { %v1723_v41 = vshrl.u32 %v5242_v56, 16  ;;  %v2867_v52 = vrot.slane %v2865_v59, 4  ;;  %v2870_v53 = vrot.slane %v2868_v32, 5  ;;  %v3700_v18 = vcombine.low %v2805_v35, %v2815_v43 }
  0xdf   : > { %v1721_v9 = vor.u32 %v1719_v25, %v1718_v6  ;;  %v2848_v23 = vrot.slane %v2847_v57, 4  ;;  %v5295_v12 = vrot.slane %v2874_v48, 5  ;;  %v2891_v61 = vrot.slane %v2889_v62, 4  ;;  %v2397_v62 = vld [vmem:[#allocation2 + $0x5c] sm:$0x1] }
  0xe0   : > { %v2894_v51 = vrot.slane %v2892_v14, 5  ;;  %v2862_v15 = vrot.slane %v2860_v4, 5  ;;  %v1726_v38 = vshll.u32 %v5242_v56, 16  ;;  %v5298_v60 = vrot.slane %v2898_v8, 5 }
  0xe1   : > { %v2904_v11 = vrot.slane %v2902_v16, 4  ;;  %v2858_v10 = vrot.slane %v2857_v34, 4  ;;  %v1725_v40 = vrot.slane %v1723_v41, 7  ;;  %v2871_v21 = vor.u32 %v2870_v53, %v2867_v52 }
  0xe2   : > { %3958 = vmatmul.mubr.msk.bf16.gmra.mrb[8].mxu0 %vm1006_vm3, %v5058_v22  ;;  %v2839_v22 = vsel %vm4692_vm5, %v2834_v7, %v2838_v55  ;;  %v2884_v1 = vshll.u32 %v2391_v29, 16  ;;  %v1742_v3 = vsel %vm4880_vm7, 0, %v1714_v39  ;;  %v1743_v19 = vsel %vm4880_vm7, 0, %v1721_v9  ;;  %v5617_v55 = vld [vmem:[#allocation36_spill] sm:$0xff] }
  0xe3   : > { %3961 = vmatprep.mubr.msk.bf16.mxu0 %vm1006_vm3, %v5104_v30  ;;  %v2880_v30 = vrot.slane %v2878_v31, 4  ;;  %v3701_v45 = vcombine.low %v2829_v44, %v2839_v22  ;;  %v2895_v17 = vor.u32 %v2894_v51, %v2891_v61  ;;  %v2908_v7 = vshll.u32 %v2394_v36, 16  ;;  %v2400_v22 = vld [vmem:[#allocation2 + $0x68] sm:$0x1] }
  0xe4   : > { %3882 = vmatmul.mubr.msk.bf16.gmra.mrb[4].mxu1 %vm1006_vm3, %v1740_v58  ;;  %v2853_v58 = vsel %vm4692_vm5, %v2848_v23, %v5272_v63  ;;  %v2913_v35 = vshrl.u32 %v5043_v47, 16  ;;  %v2905_v27 = vor.u32 %v2904_v11, %v5298_v60  ;;  %v2916_v44 = vshll.u32 %v5043_v47, 16 }
  0xe5   : > { %3885 = vmatprep.mubr.msk.bf16.mxu1 %vm1006_vm3, %v1741_v37  ;;  %v2881_v37 = vor.u32 %v2880_v30, %v5295_v12  ;;  %v2922_v5 = vshll.u32 %v5617_v55, 16  ;;  %v2926_v42 = vshrl.u32 %v5617_v55, 16  ;;  %v2863_v63 = vsel %vm4692_vm5, %v2858_v10, %v2862_v15 }
  0xe6   : > { %v1728_v24 = vor.u32 %v1726_v38, %v1725_v40  ;;  %v2872_v59 = vrot.slane %v2871_v21, 4  ;;  %v2886_v32 = vrot.slane %v2884_v1, 5  ;;  %v2940_v43 = vshll.u32 %v5080_v13, 16 }
  0xe7   : > { %v2946_v47 = vshll.u32 %v5082_v20, 16  ;;  %v2950_v6 = vshrl.u32 %v5082_v20, 16  ;;  %v2882_v25 = vrot.slane %v2881_v37, 4  ;;  %v2896_v57 = vrot.slane %v2895_v17, 4  ;;  %v2403_v37 = vld [vmem:[#allocation2 + $0x74] sm:$0x1] }
  0xe8   : > { %v2910_v28 = vrot.slane %v2908_v7, 5  ;;  %v2915_v48 = vrot.slane %v2913_v35, 4  ;;  %v2906_v31 = vrot.slane %v2905_v27, 4  ;;  %v2918_v14 = vrot.slane %v2916_v44, 5 }
  0xe9   : > { %v2924_v39 = vrot.slane %v2922_v5, 5  ;;  %v2928_v4 = vrot.slane %v2926_v42, 4  ;;  %v3702_v8 = vcombine.low %v2853_v58, %v2863_v63  ;;  %v2942_v34 = vrot.slane %v2940_v43, 5 }
  0xea   : > { %3962 = vmatmul.mubr.msk.bf16.gmra.mrb[12].mxu0 %vm1006_vm3, %v5129_v2  ;;  %v2937_v2 = vshrl.u32 %v5080_v13, 16  ;;  %v2948_v41 = vrot.slane %v2946_v47, 5  ;;  %v2952_v13 = vrot.slane %v2950_v6, 4  ;;  %v1744_v52 = vsel %vm4880_vm7, 0, %v1728_v24 }
  0xeb   : > { %3967 = vmatprep.mubr.msk.bf16.mxu0 %vm1006_vm3, %v3700_v18  ;;  %v2877_v20 = vsel %vm4692_vm5, %v2872_v59, %v5295_v12  ;;  %v2887_v53 = vsel %vm4692_vm5, %v2882_v25, %v2886_v32  ;;  %v2932_v18 = vshll.u32 %v2397_v62, 16  ;;  %v2901_v9 = vsel %vm4692_vm5, %v2896_v57, %v5298_v60 }
  0xec   : > { %3886 = vmatmul.mubr.msk.bf16.gmra.mrb[8].mxu1 %vm1006_vm3, %v1742_v3  ;;  %v2939_v16 = vrot.slane %v2937_v2, 4  ;;  %v2911_v23 = vsel %vm4692_vm5, %v2906_v31, %v2910_v28  ;;  %v2919_v46 = vor.u32 %v2918_v14, %v2915_v48  ;;  %v2929_v29 = vor.u32 %v2928_v4, %v2924_v39 }
  0xed   : > { %3889 = vmatprep.mubr.msk.bf16.mxu1 %vm1006_vm3, %v1743_v19  ;;  %v2961_v12 = vshrl.u32 %v5108_v49, 16  ;;  %v2964_v30 = vshll.u32 %v5108_v49, 16  ;;  %v2970_v61 = vshll.u32 %v5114_v26, 16  ;;  %v2974_v51 = vshrl.u32 %v5114_v26, 16 }
  0xee   : > { %v2943_v15 = vor.u32 %v2942_v34, %v2939_v16  ;;  %v2953_v38 = vor.u32 %v2952_v13, %v2948_v41  ;;  %v2956_v36 = vshll.u32 %v2400_v22, 16  ;;  %v3703_v60 = vcombine.low %v2877_v20, %v2887_v53 }
  0xef   : > { %v3704_v11 = vcombine.low %v2901_v9, %v2911_v23  ;;  %v2920_v10 = vrot.slane %v2919_v46, 4  ;;  %v2930_v40 = vrot.slane %v2929_v29, 4  ;;  %v2934_v21 = vrot.slane %v2932_v18, 5 }
  0xf0   : > { %v2963_v1 = vrot.slane %v2961_v12, 4  ;;  %v2966_v3 = vrot.slane %v2964_v30, 5  ;;  %v2972_v49 = vrot.slane %v2970_v61, 5  ;;  %v2944_v19 = vrot.slane %v2943_v15, 4 }
  0xf1   : > { %v2954_v58 = vrot.slane %v2953_v38, 4  ;;  %v2958_v26 = vrot.slane %v2956_v36, 5  ;;  %v2925_v17 = vsel %vm4692_vm5, %v2920_v10, %v2924_v39  ;;  %v2980_v27 = vshll.u32 %v2403_v37, 16 }
  0xf2   : > { %3968 = vmatmul.mubr.msk.bf16.vlgmr.msra.gmra.mrb[0].mxu0 %vm1006_vm3, %v3701_v45  ;;  %v2976_v45 = vrot.slane %v2974_v51, 4  ;;  %v2967_v7 = vor.u32 %v2966_v3, %v2963_v1  ;;  %v2949_v44 = vsel %vm4692_vm5, %v2944_v19, %v2948_v41  ;;  %vm3258_vm2 = vcmask 25600  }
  0xf3   : > { %3971 = vmatprep.mubr.msk.bf16.mxu0 %vm1006_vm3, %v3702_v8  ;;  %v2959_v55 = vsel %vm4692_vm5, %v2954_v58, %v2958_v26  ;;  %v2982_v59 = vrot.slane %v2980_v27, 5 }
  0xf4   : > { %3890 = vmatmul.mubr.msk.bf16.gmra.mrb[12].mxu1 %vm1006_vm3, %v1744_v52  ;;  %v2977_v35 = vor.u32 %v2976_v45, %v2972_v49  ;;  %v3706_v42 = vcombine.low %v2949_v44, %v2959_v55  ;;  %v2968_v63 = vrot.slane %v2967_v7, 4 }
  0xf5   : > { %3903 = vmatprep.mubr.msk.bf16.mxu1 %vm1006_vm3, %v5194_v33  ;;  %v2935_v33 = vsel %vm4692_vm5, %v2930_v40, %v2934_v21 }
  0xf6   : > { %v3705_v5 = vcombine.low %v2925_v17, %v2935_v33  ;;  %v2978_v24 = vrot.slane %v2977_v35, 4 }
  0xf8   : > { %v2983_v32 = vsel %vm4692_vm5, %v2978_v24, %v2982_v59 }
  0xfa   : > { %3972 = vmatmul.mubr.msk.bf16.gmra.mrb[4].mxu0 %vm1006_vm3, %v3703_v60 }
  0xfb   : > { %3975 = vmatprep.mubr.msk.bf16.mxu0 %vm1006_vm3, %v3704_v11 }
  0xfc   : > { %3904 = vmatmul.mubr.msk.bf16.vlgmr.msra.gmra.mrb[8].mxu1 %vm1006_vm3, %v5208_v0  ;;  %v2973_v0 = vsel %vm4692_vm5, %v2968_v63, %v2972_v49 }
  0xfd   : > { %3907 = vmatprep.mubr.msk.bf16.mxu1 %vm1006_vm3, %v5230_v54  ;;  %v3707_v54 = vcombine.low %v2973_v0, %v2983_v32 }
 0x102   : > { %3976 = vmatmul.mubr.msk.bf16.gmra.mrb[8].mxu0 %vm1006_vm3, %v3705_v5 }
 0x103   : > { %3979 = vmatprep.mubr.msk.bf16.mxu0 %vm1006_vm3, %v3706_v42 }
 0x104   : > { %3908 = vmatmul.mubr.msk.bf16.gmra.mrb[12].mxu1 %vm1006_vm3, %v5242_v56 }
 0x10a   : > { %3980 = vmatmul.mubr.msk.bf16.gmra.mrb[12].mxu0 %vm1006_vm3, %v3707_v54 }
 0x1af   : > { %v3879_v2 = vpop.f32.mrb[0].mxu1 }
 0x1b0   : > { %v1808_v43 = vpop.f32.mrb[1].mxu1 }
 0x1b1   : > { %v3880_v47 = vpop.f32.mrb[2].mxu1 }
 0x1b2   : > { %v1811_v6 = vpop.f32.mrb[3].mxu1 }
 0x1b7   : > { %v3883_v25 = vpop.f32.mrb[4].mxu1 }
 0x1b8   : > { %v1824_v57 = vpop.f32.mrb[5].mxu1 }
 0x1b9   : > { %v3884_v28 = vpop.f32.mrb[6].mxu1 }
 0x1ba   : > { %v1827_v48 = vpop.f32.mrb[7].mxu1 }
 0x1c5   : > { %v3969_v50 = vpop.f32.mrb[0].mxu0 }
 0x1c6   : > { %v3985_v31 = vadd.f32 %v3969_v50, %v3879_v2  ;;  %v3071_v62 = vpop.f32.mrb[1].mxu0 }
 0x1c7   : > { %v3986_v14 = vadd.f32 %v3071_v62, %v1808_v43  ;;  %v3970_v56 = vpop.f32.mrb[2].mxu0 }
 0x1c8   : > { %3152 = vst.msk [vmem:[%s4562_s20 + $0x10] sm:$0xff] %vm1006_vm3, %v3985_v31  ;;  %v3987_v39 = vadd.f32 %v3970_v56, %v3880_v47  ;;  %v3074_v4 = vpop.f32.mrb[3].mxu0  ;;  %v3205_v34 = vmul.f32 %v3985_v31, %v3985_v31  ;;  %v3169_v18 = vsel %vm1006_vm3, %v3985_v31, 0.0 }
 0x1c9   : > { %3150 = vst.msk [vmem:[%s4562_s20] sm:$0xff] %vm1006_vm3, %v3986_v14  ;;  %v3203_v8 = vmul.f32 %v3986_v14, %v3986_v14  ;;  %v3988_v16 = vadd.f32 %v3074_v4, %v1811_v6  ;;  %v3166_v41 = vsel %vm1006_vm3, %v3986_v14, 0.0 }
 0x1ca   : > { %3153 = vst.msk [vmem:[%s4562_s20 + $0x18] sm:$0xff] %vm1006_vm3, %v3987_v39  ;;  %v3206_v20 = vmul.f32 %v3987_v39, %v3987_v39  ;;  %v3222_v61 = vsel %vm1006_vm3, %v3205_v34, 0.0  ;;  %v3171_v51 = vsel %vm1006_vm3, %v3987_v39, 0.0 }
 0x1cb   : > { %3151 = vst.msk [vmem:[%s4562_s20 + $0x8] sm:$0xff] %vm1006_vm3, %v3988_v16  ;;  %v3167_v13 = vsel %vm1006_vm3, %v3988_v16, 0.0  ;;  %v3204_v52 = vmul.f32 %v3988_v16, %v3988_v16  ;;  %v3219_v22 = vsel %vm1006_vm3, %v3203_v8, 0.0 }
 0x1cc   : > { %v3168_v53 = vadd.f32 %v3167_v13, %v3166_v41  ;;  %v3224_v60 = vsel %vm1006_vm3, %v3206_v20, 0.0 }
 0x1cd   : > { %v3220_v9 = vsel %vm1006_vm3, %v3204_v52, 0.0  ;;  %v3973_v23 = vpop.f32.mrb[4].mxu0 }
 0x1ce   : > { %v3170_v46 = vadd.f32 %v3169_v18, %v3168_v53  ;;  %v3221_v29 = vadd.f32 %v3220_v9, %v3219_v22  ;;  %v3989_v12 = vadd.f32 %v3973_v23, %v3883_v25  ;;  %v3087_v30 = vpop.f32.mrb[5].mxu0 }
 0x1cf   : > { %v3990_v15 = vadd.f32 %v3087_v30, %v1824_v57  ;;  %v3974_v38 = vpop.f32.mrb[6].mxu0  ;;  %v3905_v36 = vpop.f32.mrb[8].mxu1 }
 0x1d0   : > { %v3223_v11 = vadd.f32 %v3222_v61, %v3221_v29  ;;  %3156 = vst.msk [vmem:[%s4562_s20 + $0x30] sm:$0xff] %vm1006_vm3, %v3989_v12  ;;  %v3172_v10 = vadd.f32 %v3171_v51, %v3170_v46  ;;  %v3090_v40 = vpop.f32.mrb[7].mxu0  ;;  %v1974_v21 = vpop.f32.mrb[9].mxu1  ;;  %v3991_v49 = vadd.f32 %v3974_v38, %v3884_v28  ;;  %v3209_v7 = vmul.f32 %v3989_v12, %v3989_v12 }
 0x1d1   : > { %3154 = vst.msk [vmem:[%s4562_s20 + $0x20] sm:$0xff] %vm1006_vm3, %v3990_v15  ;;  %v3173_v1 = vsel %vm1006_vm3, %v3990_v15, 0.0  ;;  %v3207_v3 = vmul.f32 %v3990_v15, %v3990_v15  ;;  %v3992_v45 = vadd.f32 %v3090_v40, %v1827_v48  ;;  %v3906_v19 = vpop.f32.mrb[10].mxu1  ;;  %v3177_v55 = vsel %vm1006_vm3, %v3989_v12, 0.0 }
 0x1d2   : > { %v3174_v58 = vadd.f32 %v3173_v1, %v3172_v10  ;;  %v3225_v26 = vadd.f32 %v3224_v60, %v3223_v11  ;;  %v1977_v37 = vpop.f32.mrb[11].mxu1  ;;  %3157 = vst.msk [vmem:[%s4562_s20 + $0x38] sm:$0xff] %vm1006_vm3, %v3991_v49  ;;  %v3210_v42 = vmul.f32 %v3991_v49, %v3991_v49  ;;  %v3179_v32 = vsel %vm1006_vm3, %v3991_v49, 0.0 }
 0x1d3   : > { %v3226_v17 = vsel %vm1006_vm3, %v3207_v3, 0.0  ;;  %3155 = vst.msk [vmem:[%s4562_s20 + $0x28] sm:$0xff] %vm1006_vm3, %v3992_v45  ;;  %v3175_v33 = vsel %vm1006_vm3, %v3992_v45, 0.0  ;;  %v3208_v44 = vmul.f32 %v3992_v45, %v3992_v45  ;;  %v3230_v6 = vsel %vm1006_vm3, %v3209_v7, 0.0 }
 0x1d4   : > { %v3227_v35 = vadd.f32 %v3226_v17, %v3225_v26  ;;  %v3176_v27 = vadd.f32 %v3175_v33, %v3174_v58  ;;  %v3232_v39 = vsel %vm1006_vm3, %v3210_v42, 0.0 }
 0x1d5   : > { %v3977_v5 = vpop.f32.mrb[8].mxu0  ;;  %v3228_v24 = vsel %vm1006_vm3, %v3208_v44, 0.0 }
 0x1d6   : > { %v3178_v63 = vadd.f32 %v3177_v55, %v3176_v27  ;;  %v3993_v59 = vadd.f32 %v3977_v5, %v3905_v36  ;;  %v3103_v0 = vpop.f32.mrb[9].mxu0  ;;  %v3229_v54 = vadd.f32 %v3228_v24, %v3227_v35 }
 0x1d7   : > { %v3994_v2 = vadd.f32 %v3103_v0, %v1974_v21  ;;  %v3978_v43 = vpop.f32.mrb[10].mxu0  ;;  %v3909_v47 = vpop.f32.mrb[12].mxu1 }
 0x1d8   : > { %3160 = vst.msk [vmem:[%s4562_s20 + $0x50] sm:$0xff] %vm1006_vm3, %v3993_v59  ;;  %v3180_v25 = vadd.f32 %v3179_v32, %v3178_v63  ;;  %v3995_v57 = vadd.f32 %v3978_v43, %v3906_v19  ;;  %v3106_v28 = vpop.f32.mrb[11].mxu0  ;;  %v1990_v48 = vpop.f32.mrb[13].mxu1  ;;  %v3231_v50 = vadd.f32 %v3230_v6, %v3229_v54  ;;  %v3213_v52 = vmul.f32 %v3993_v59, %v3993_v59 }
 0x1d9   : > { %3158 = vst.msk [vmem:[%s4562_s20 + $0x40] sm:$0xff] %vm1006_vm3, %v3994_v2  ;;  %v3181_v31 = vsel %vm1006_vm3, %v3994_v2, 0.0  ;;  %v3211_v62 = vmul.f32 %v3994_v2, %v3994_v2  ;;  %v3996_v14 = vadd.f32 %v3106_v28, %v1977_v37  ;;  %v3910_v56 = vpop.f32.mrb[14].mxu1  ;;  %v3185_v53 = vsel %vm1006_vm3, %v3993_v59, 0.0 }
 0x1da   : > { %v3182_v4 = vadd.f32 %v3181_v31, %v3180_v25  ;;  %3161 = vst.msk [vmem:[%s4562_s20 + $0x58] sm:$0xff] %vm1006_vm3, %v3995_v57  ;;  %v1993_v8 = vpop.f32.mrb[15].mxu1  ;;  %v3233_v16 = vadd.f32 %v3232_v39, %v3231_v50  ;;  %v3214_v23 = vmul.f32 %v3995_v57, %v3995_v57  ;;  %v3187_v30 = vsel %vm1006_vm3, %v3995_v57, 0.0 }
 0x1db   : > { %v3234_v34 = vsel %vm1006_vm3, %v3211_v62, 0.0  ;;  %3159 = vst.msk [vmem:[%s4562_s20 + $0x48] sm:$0xff] %vm1006_vm3, %v3996_v14  ;;  %v3183_v41 = vsel %vm1006_vm3, %v3996_v14, 0.0  ;;  %v3212_v13 = vmul.f32 %v3996_v14, %v3996_v14  ;;  %v3238_v38 = vsel %vm1006_vm3, %v3213_v52, 0.0 }
 0x1dc   : > { %v3184_v20 = vadd.f32 %v3183_v41, %v3182_v4  ;;  %v3235_v18 = vadd.f32 %v3234_v34, %v3233_v16  ;;  %v3240_v3 = vsel %vm1006_vm3, %v3214_v23, 0.0 }
 0x1dd   : > { %v3236_v22 = vsel %vm1006_vm3, %v3212_v13, 0.0  ;;  %v3981_v9 = vpop.f32.mrb[12].mxu0 }
 0x1de   : > { %v3186_v46 = vadd.f32 %v3185_v53, %v3184_v20  ;;  %v3997_v29 = vadd.f32 %v3981_v9, %v3909_v47  ;;  %v3119_v12 = vpop.f32.mrb[13].mxu0  ;;  %v3237_v61 = vadd.f32 %v3236_v22, %v3235_v18 }
 0x1df   : > { %v3998_v51 = vadd.f32 %v3119_v12, %v1990_v48  ;;  %v3982_v15 = vpop.f32.mrb[14].mxu0 }
 0x1e0   : > { %3164 = vst.msk [vmem:[%s4562_s20 + $0x70] sm:$0xff] %vm1006_vm3, %v3997_v29  ;;  %v3188_v36 = vadd.f32 %v3187_v30, %v3186_v46  ;;  %v3999_v60 = vadd.f32 %v3982_v15, %v3910_v56  ;;  %v3122_v11 = vpop.f32.mrb[15].mxu0  ;;  %v3239_v10 = vadd.f32 %v3238_v38, %v3237_v61  ;;  %v3217_v37 = vmul.f32 %v3997_v29, %v3997_v29 }
 0x1e1   : > { %3162 = vst.msk [vmem:[%s4562_s20 + $0x60] sm:$0xff] %vm1006_vm3, %v3998_v51  ;;  %v3189_v40 = vsel %vm1006_vm3, %v3998_v51, 0.0  ;;  %v3215_v21 = vmul.f32 %v3998_v51, %v3998_v51  ;;  %v4000_v1 = vadd.f32 %v3122_v11, %v1993_v8  ;;  %v3193_v33 = vsel %vm1006_vm3, %v3997_v29, 0.0 }
 0x1e2   : > { %v3190_v49 = vadd.f32 %v3189_v40, %v3188_v36  ;;  %3165 = vst.msk [vmem:[%s4562_s20 + $0x78] sm:$0xff] %vm1006_vm3, %v3999_v60  ;;  %v3241_v45 = vadd.f32 %v3240_v3, %v3239_v10  ;;  %v3218_v27 = vmul.f32 %v3999_v60, %v3999_v60  ;;  %v3195_v55 = vsel %vm1006_vm3, %v3999_v60, 0.0 }
 0x1e3   : > { %v3242_v19 = vsel %vm1006_vm3, %v3215_v21, 0.0  ;;  %3163 = vst.msk [vmem:[%s4562_s20 + $0x68] sm:$0xff] %vm1006_vm3, %v4000_v1  ;;  %v3191_v58 = vsel %vm1006_vm3, %v4000_v1, 0.0  ;;  %v3216_v26 = vmul.f32 %v4000_v1, %v4000_v1  ;;  %v3246_v42 = vsel %vm1006_vm3, %v3217_v37, 0.0  ;;  %s3717_s20 = sshll.u32 %s5618_s10, 1 }
 0x1e4   : > { %v3192_v17 = vadd.f32 %v3191_v58, %v3190_v49  ;;  %v3243_v7 = vadd.f32 %v3242_v19, %v3241_v45  ;;  %v3248_v59 = vsel %vm1006_vm3, %v3218_v27, 0.0  ;;  %s3286_s27 = sadd.s32 %s4297_s30, %s3717_s20  ;;  %s5623_s30 = sand.u32 1, %s5619_s14  }
 0x1e5   : > { %v3244_v35 = vsel %vm1006_vm3, %v3216_v26, 0.0  ;;  %s3718_s23 = sshll.u32 %s3286_s27, 5  ;;  %s3271_s11 = scalar_lea.sflag [#allocation4], %s5623_s30 }
 0x1e6   : > { %v3194_v44 = vadd.f32 %v3193_v33, %v3192_v17  ;;  %v3245_v5 = vadd.f32 %v3244_v35, %v3243_v7  ;;  %s5439_s29 = scalar_lea.hbm %s5621_s28, %s3718_s23 }
 0x1e8   : > { %v3196_v63 = vadd.f32 %v3195_v55, %v3194_v44  ;;  %v3247_v24 = vadd.f32 %v3246_v42, %v3245_v5 }
 0x1ea   : > { %v3197_v0 = vrot.slane %v3196_v63, 4  ;;  %v3249_v32 = vadd.f32 %v3248_v59, %v3247_v24 }
 0x1ec   : > { %v3198_v54 = vadd.f32 %v3197_v0, %v3196_v63  ;;  %v3250_v2 = vrot.slane %v3249_v32, 4 }
 0x1ee   : > { %v3199_v43 = vrot.slane %v3198_v54, 2  ;;  %v3251_v47 = vadd.f32 %v3250_v2, %v3249_v32 }
 0x1f0   : > { %v3200_v6 = vadd.f32 %v3199_v43, %v3198_v54  ;;  %v3252_v25 = vrot.slane %v3251_v47, 2 }
 0x1f2   : > { %v3201_v57 = vrot.slane %v3200_v6, 1  ;;  %v3253_v28 = vadd.f32 %v3252_v25, %v3251_v47 }
 0x1f4   : > { %v3254_v48 = vrot.slane %v3253_v28, 1  ;;  %v3202_v50 = vadd.f32 %v3201_v57, %v3200_v6 }
 0x1f6   : > { %v3255_v31 = vadd.f32 %v3254_v48, %v3253_v28 }
 0x1f8   : > { %v3257_v62 = vsel %vm993_vm6, %v3202_v50, %v3255_v31 }
 0x1f9   : > { %3259 = vst.msk [vmem:[%s548_s9] sm:$0x3] %vm3258_vm2, %v3257_v62 }
 0x1fa   : > { %4232 = shalt.err (!%p4229_p0)
}
 0x1fb   : > { %s4233_s25 = scalar_lea.hbm %s5439_s29, 32  ;;  %s4237_s21 = scalar_lea.hbm %s5622_s1, 128 }
 0x1fc   : > { %p4234_p1 = scmp.ne.s32.totalorder %s5439_s29, %s4233_s25  ;;  %p4238_p5 = scmp.lt.u32.totalorder %s5439_s29, %s5622_s1 }
 0x1fd   : > { %p4239_p6 = scmp.lt.u32.totalorder %s4237_s21, %s4233_s25  ;;  %p4241_p9 = scmp.lt.u32.totalorder %s4233_s25, %s5439_s29 }
 0x1fe   : > { %p4235_p2 = pnand %p4234_p1, %p4413_p3 }
 0x1ff   : > { %p4240_p7 = por %p4239_p6, %p4238_p5 }
 0x200   : > { %p4236_p4 = pneg %p4235_p2 }
 0x201   : > { %p4242_p10 = por %p4241_p9, %p4240_p7 }
 0x203   : > { %p4243_p11 = pnand %p4242_p10, %p4236_p4 }
 0x205   : > { %4246 = shalt.err (!%p4243_p11)
}
 0x206   : > { %4123 = dma.vmem_to_hbm [thread:$0]  (%p4413_p3), %s5441_s17, 32, %s5439_s29, %s3271_s11  }
 0x207 PF: > { %s5624_s10 = sld [smem:[#allocation12_spill]]  ;;  %s5625_s20 = sld [smem:[#allocation6_spill]] }
 0x20d   : > { %p4129_p12 = scmp.ge.s32.totalorder %s5624_s10, 2  ;;  %s3315_s27 = sand.u32 1, %s5625_s20  }
 0x20e   : > { %s3316_s23 = scalar_lea.sflag [#allocation4], %s3315_s27 }
 0x20f   : > { %p4126_p13 = pnand %p4129_p12, %p4422_p8 }
 0x211   : > { %4280 = dma.done.wait (!%p4126_p13), %s3316_s23, 32  }
 0x212   : > { %4282 = vsyncadd (!%p4126_p13), %s3316_s23, 4294967264  ;;  %s22_s12 = sadd.s32 1, %s5624_s10   ;;  %s5627_s27 = sld [smem:[#allocation7_spill]] }
 0x213   : > { %p19_p0 = scmp.ge.s32.totalorder %s22_s12, 6   ;;  %s5628_s28 = sld [smem:[#allocation8_spill]] }
 0x214   : > { %s5629_s29 = sld [smem:[#allocation17_spill]]  ;;  %s5630_s30 = sld [smem:[#allocation10_spill]] }
 0x215   : > { %s5631_s9 = sld [smem:[#allocation11_spill]]  ;;  %s5632_s10 = sld [smem:[#allocation13_spill]] }
 0x216   : > { %s5633_s11 = sld [smem:[#allocation15_spill]]  ;;  %21 = sbr.rel (!%p19_p0) target bundleno = 8 (0x8), region = 129 }
 0x21d   :  { %3321 = vsyncpa [#allocation4], 1 }
 0x21e   :  { %3323 = vsyncpa [#allocation4 + $0x1], 1 }

</bundles_post_ra>
